<compile_context>
chip_gen: v7x
topology: tpu7x:2x2x1
jax: 0.10.0
libtpu: 0.0.40
codegen_flags: <defaults>
</compile_context>

<pallas_src>
import numpy as np
import jax
import jax.numpy as jnp
from jax import lax
from jax.experimental import pallas as pl
from jax.experimental.pallas import tpu as pltpu


def _gaussian_1d(window_size, sigma=1.5):
    xs = np.arange(window_size, dtype=np.float64)
    g = np.exp(-((xs - window_size // 2) ** 2) / (2.0 * sigma ** 2))
    return (g / g.sum()).astype(np.float32)


def _band_matrix(n_in, n_out, g):
    """m[j + k, j] = g[k]  =>  (x @ m)[i, j] = sum_k x[i, j + k] * g[k]."""
    m = np.zeros((n_in, n_out), np.float32)
    for j in range(n_out):
        m[j:j + g.shape[0], j] = g
    return m


def _make_ssim_kernel(C, H, H_out):
    def kernel(c_ref, x1_ref, x2_ref, kh_ref, kw_ref, o_ref):
        c1 = c_ref[0]
        c2 = c_ref[1]

        x1 = x1_ref[0]            # [C*H, W]  f32 (channels stacked along rows)
        x2 = x2_ref[0]            # [C*H, W]
        kh = kh_ref[...]          # [H, H_out]  banded gaussian (vertical pass)
        kw = kw_ref[...]          # [W, W_out]  banded gaussian (horizontal pass)

        # Five pre-conv statistics for all C channels stacked along the
        # sublane axis (H % 8 == 0 keeps every chunk tile-aligned), so the
        # whole horizontal gaussian pass is a single MXU matmul.
        stack = jnp.concatenate(
            [x1, x2, x1 * x1, x2 * x2, x1 * x2], axis=0)                 # [5CH, W]
        t = lax.dot_general(stack, kw, (((1,), (0,)), ((), ())),
                            preferred_element_type=jnp.float32)          # [5CH, W_out]

        # Vertical pass: contract the row axis of each H-aligned chunk against
        # kh's dim 0 directly (no transpose of kh or t).
        def vconv(stat, c):
            r0 = (stat * C + c) * H                                      # static offset
            return lax.dot_general(kh, t[r0:r0 + H, :],
                                   (((0,), (0,)), ((), ())),
                                   preferred_element_type=jnp.float32)   # [H_out, W_out]

        acc = None
        for c in range(C):
            mu1 = vconv(0, c)
            mu2 = vconv(1, c)
            s11 = vconv(2, c)
            s22 = vconv(3, c)
            s12 = vconv(4, c)

            mu1_sq = mu1 * mu1
            mu2_sq = mu2 * mu2
            mu1_mu2 = mu1 * mu2
            sigma1_sq = s11 - mu1_sq
            sigma2_sq = s22 - mu2_sq
            sigma12 = s12 - mu1_mu2

            v1 = 2.0 * sigma12 + c2
            v2 = sigma1_sq + sigma2_sq + c2
            ssim_c = (2.0 * mu1_mu2 + c1) * v1 / ((mu1_sq + mu2_sq + c1) * v2)
            acc = ssim_c if acc is None else acc + ssim_c

        # Full in-kernel reduction -> one f32 per batch item.
        total = jnp.sum(jnp.sum(acc, axis=1, keepdims=True),
                        axis=0, keepdims=True)                           # [1, 1]
        o_ref[...] = total[None]                                         # [1, 1, 1]

    return kernel


def ssim_pallas(img1, img2, *, window_size=11, size_average=True, val_range=None):
    """img1, img2: [B, C, H, W].  Returns scalar (size_average) or [B]."""
    B, C, H, W = img1.shape
    assert H >= window_size and W >= window_size
    H_out = H - window_size + 1
    W_out = W - window_size + 1

    # Dynamic range L (matches the torch branching on img1's value range).
    if val_range is None:
        max_val = jnp.where(jnp.max(img1) > 128, 255.0, 1.0)
        min_val = jnp.where(jnp.min(img1) < -0.5, -1.0, 0.0)
        L = max_val - min_val
    else:
        L = jnp.float32(val_range)
    c1c2 = jnp.stack([(0.01 * L) ** 2, (0.03 * L) ** 2]).astype(jnp.float32)

    g = _gaussian_1d(window_size, 1.5)
    kh = jnp.asarray(_band_matrix(H, H_out, g))
    kw = jnp.asarray(_band_matrix(W, W_out, g))

    x1 = img1.reshape(B, C * H, W).astype(jnp.float32)
    x2 = img2.reshape(B, C * H, W).astype(jnp.float32)

    flops_per_step = (2 * (5 * C * H) * W * W_out        # horizontal pass (1 matmul)
                      + 5 * C * 2 * H_out * H * W_out    # vertical passes
                      + C * 16 * H_out * W_out)          # elementwise SSIM math
    bytes_accessed = (2 * B * C * H * W + H * H_out + W * W_out + B + 2) * 4

    sums = pl.pallas_call(
        _make_ssim_kernel(C, H, H_out),
        out_shape=jax.ShapeDtypeStruct((B, 1, 1), jnp.float32),
        grid_spec=pltpu.PrefetchScalarGridSpec(
            num_scalar_prefetch=0,
            grid=(B,),
            in_specs=[
                pl.BlockSpec(memory_space=pltpu.MemorySpace.SMEM),    # [2] C1, C2
                pl.BlockSpec((1, C * H, W), lambda i: (i, 0, 0)),     # img1 batch slab
                pl.BlockSpec((1, C * H, W), lambda i: (i, 0, 0)),     # img2 batch slab
                pl.BlockSpec((H, H_out), lambda i: (0, 0)),           # kh (broadcast)
                pl.BlockSpec((W, W_out), lambda i: (0, 0)),           # kw (broadcast)
            ],
            out_specs=pl.BlockSpec((1, 1, 1), lambda i: (i, 0, 0)),
        ),
        compiler_params=pltpu.CompilerParams(
            dimension_semantics=("parallel",)),
        cost_estimate=pl.CostEstimate(
            flops=B * flops_per_step,
            transcendentals=0,
            bytes_accessed=bytes_accessed),
    )(c1c2, x1, x2, kh, kw)

    # TODO(synk): for very large C*H*W the per-batch slab should be tiled along
    # rows to bound VMEM; not needed for typical SSIM image sizes.
    per_batch = sums[:, 0, 0]                     # [B], sum over (C, H_out, W_out)
    denom = C * H_out * W_out
    if size_average:
        return jnp.sum(per_batch) / (B * denom)
    return per_batch / denom


def ssim_reference(img1, img2, *, window_size=11, size_average=True, val_range=None):
    """Pure-JAX mirror of the PyTorch `ssim` (for validation)."""
    B, C, H, W = img1.shape
    g = _gaussian_1d(window_size, 1.5)
    w2d = np.outer(g, g).astype(np.float32)
    window = jnp.asarray(np.broadcast_to(w2d, (C, 1, window_size, window_size)).copy())

    def conv(x):
        return lax.conv_general_dilated(
            x, window, window_strides=(1, 1), padding="VALID",
            dimension_numbers=("NCHW", "OIHW", "NCHW"),
            feature_group_count=C)

    if val_range is None:
        max_val = jnp.where(jnp.max(img1) > 128, 255.0, 1.0)
        min_val = jnp.where(jnp.min(img1) < -0.5, -1.0, 0.0)
        L = max_val - min_val
    else:
        L = jnp.float32(val_range)

    mu1, mu2 = conv(img1), conv(img2)
    mu1_sq, mu2_sq, mu1_mu2 = mu1 ** 2, mu2 ** 2, mu1 * mu2
    sigma1_sq = conv(img1 * img1) - mu1_sq
    sigma2_sq = conv(img2 * img2) - mu2_sq
    sigma12 = conv(img1 * img2) - mu1_mu2
    C1 = (0.01 * L) ** 2
    C2 = (0.03 * L) ** 2
    v1 = 2.0 * sigma12 + C2
    v2 = sigma1_sq + sigma2_sq + C2
    ssim_map = (2 * mu1_mu2 + C1) * v1 / ((mu1_sq + mu2_sq + C1) * v2)
    if size_average:
        return jnp.mean(ssim_map)
    return jnp.mean(ssim_map, axis=(1, 2, 3))


if __name__ == "__main__":
    # Small shapes consistent with the module: B=2, C=3 channels, 32x32 images,
    # 11x11 gaussian window -> 22x22 valid-conv SSIM map.
    B, C, H, W = 2, 3, 32, 32
    window_size = 11

    key = jax.random.PRNGKey(0)
    k1, k2 = jax.random.split(key)
    img1 = jax.random.uniform(k1, (B, C, H, W), jnp.float32)
    img2 = jnp.clip(
        img1 + 0.1 * jax.random.normal(k2, (B, C, H, W), jnp.float32), 0.0, 1.0)

    out = ssim_pallas(img1, img2, window_size=window_size, size_average=True)
    out = jax.block_until_ready(out)

    ref = ssim_reference(img1, img2, window_size=window_size, size_average=True)
    assert out.shape == ref.shape == ()
    assert jnp.allclose(out, ref, atol=1e-4, rtol=1e-4), (float(out), float(ref))

    print("KERNEL_OK")
</pallas_src>

<mosaic_0001>
module attributes {stable_mosaic.version = 11 : i64} {
  func.func @kernel(%arg0: i32, %arg1: memref<2xf32, #tpu.memory_space<smem>>, %arg2: memref<1x96x32xf32, #tpu.memory_space<vmem>>, %arg3: memref<1x96x32xf32, #tpu.memory_space<vmem>>, %arg4: memref<32x22xf32, #tpu.memory_space<vmem>>, %arg5: memref<32x22xf32, #tpu.memory_space<vmem>>, %arg6: memref<1x1x1xf32, #tpu.memory_space<vmem>>) attributes {dimension_semantics = [#tpu.dimension_semantics<parallel>], iteration_bounds = array<i64: 2>, scalar_prefetch = 0 : i64, scratch_operands = 0 : i64, tpu.core_type = #tpu.core_type<tc>, window_params = [{transform_indices = @transform_0, window_bounds = array<i64: 2>}, {transform_indices = @transform_1, window_bounds = array<i64: 1, 96, 32>}, {transform_indices = @transform_2, window_bounds = array<i64: 1, 96, 32>}, {pipeline_mode = #tpu.pipeline_mode<synchronous>, transform_indices = @transform_3, window_bounds = array<i64: 32, 22>}, {pipeline_mode = #tpu.pipeline_mode<synchronous>, transform_indices = @transform_4, window_bounds = array<i64: 32, 22>}, {transform_indices = @transform_5, window_bounds = array<i64: 1, 1, 1>}]} {
    %c0 = arith.constant 0 : index
    %0 = memref.load %arg1[%c0] : memref<2xf32, #tpu.memory_space<smem>>
    %c1 = arith.constant 1 : index
    %1 = memref.load %arg1[%c1] : memref<2xf32, #tpu.memory_space<smem>>
    %c0_0 = arith.constant 0 : index
    %c0_1 = arith.constant 0 : index
    %c0_2 = arith.constant 0 : index
    %2 = vector.load %arg2[%c0_0, %c0_1, %c0_2] : memref<1x96x32xf32, #tpu.memory_space<vmem>>, vector<1x96x32xf32>
    %3 = vector.shape_cast %2 : vector<1x96x32xf32> to vector<96x32xf32>
    %c0_3 = arith.constant 0 : index
    %c0_4 = arith.constant 0 : index
    %c0_5 = arith.constant 0 : index
    %4 = vector.load %arg3[%c0_3, %c0_4, %c0_5] : memref<1x96x32xf32, #tpu.memory_space<vmem>>, vector<1x96x32xf32>
    %5 = vector.shape_cast %4 : vector<1x96x32xf32> to vector<96x32xf32>
    %c0_6 = arith.constant 0 : index
    %c0_7 = arith.constant 0 : index
    %6 = vector.load %arg4[%c0_6, %c0_7] : memref<32x22xf32, #tpu.memory_space<vmem>>, vector<32x22xf32>
    %c0_8 = arith.constant 0 : index
    %c0_9 = arith.constant 0 : index
    %7 = vector.load %arg5[%c0_8, %c0_9] : memref<32x22xf32, #tpu.memory_space<vmem>>, vector<32x22xf32>
    %8 = arith.mulf %3, %3 : vector<96x32xf32>
    %9 = arith.mulf %5, %5 : vector<96x32xf32>
    %10 = arith.mulf %3, %5 : vector<96x32xf32>
    %11 = tpu.concatenate %3, %5, %8, %9, %10 in 0 : vector<96x32xf32>, vector<96x32xf32>, vector<96x32xf32>, vector<96x32xf32>, vector<96x32xf32> -> vector<480x32xf32>
    %cst = arith.constant dense<0.000000e+00> : vector<480x22xf32>
    %12 = tpu.matmul %11, %7, %cst {dimension_numbers = #tpu.dot_dimension_numbers<[1], [0], [0], [1], [0, 0, 1, 1], [], []>} : vector<480x32xf32>, vector<32x22xf32>, vector<480x22xf32> -> vector<480x22xf32>
    %13 = vector.extract_strided_slice %12 {offsets = [0, 0], sizes = [32, 22], strides = [1, 1]} : vector<480x22xf32> to vector<32x22xf32>
    %cst_10 = arith.constant dense<0.000000e+00> : vector<22x22xf32>
    %14 = tpu.matmul %6, %13, %cst_10 {dimension_numbers = #tpu.dot_dimension_numbers<[0], [0], [1], [1], [0, 1, 1, 1], [], []>} : vector<32x22xf32>, vector<32x22xf32>, vector<22x22xf32> -> vector<22x22xf32>
    %15 = vector.extract_strided_slice %12 {offsets = [96, 0], sizes = [32, 22], strides = [1, 1]} : vector<480x22xf32> to vector<32x22xf32>
    %cst_11 = arith.constant dense<0.000000e+00> : vector<22x22xf32>
    %16 = tpu.matmul %6, %15, %cst_11 {dimension_numbers = #tpu.dot_dimension_numbers<[0], [0], [1], [1], [0, 1, 1, 1], [], []>} : vector<32x22xf32>, vector<32x22xf32>, vector<22x22xf32> -> vector<22x22xf32>
    %17 = vector.extract_strided_slice %12 {offsets = [192, 0], sizes = [32, 22], strides = [1, 1]} : vector<480x22xf32> to vector<32x22xf32>
    %cst_12 = arith.constant dense<0.000000e+00> : vector<22x22xf32>
    %18 = tpu.matmul %6, %17, %cst_12 {dimension_numbers = #tpu.dot_dimension_numbers<[0], [0], [1], [1], [0, 1, 1, 1], [], []>} : vector<32x22xf32>, vector<32x22xf32>, vector<22x22xf32> -> vector<22x22xf32>
    %19 = vector.extract_strided_slice %12 {offsets = [288, 0], sizes = [32, 22], strides = [1, 1]} : vector<480x22xf32> to vector<32x22xf32>
    %cst_13 = arith.constant dense<0.000000e+00> : vector<22x22xf32>
    %20 = tpu.matmul %6, %19, %cst_13 {dimension_numbers = #tpu.dot_dimension_numbers<[0], [0], [1], [1], [0, 1, 1, 1], [], []>} : vector<32x22xf32>, vector<32x22xf32>, vector<22x22xf32> -> vector<22x22xf32>
    %21 = vector.extract_strided_slice %12 {offsets = [384, 0], sizes = [32, 22], strides = [1, 1]} : vector<480x22xf32> to vector<32x22xf32>
    %cst_14 = arith.constant dense<0.000000e+00> : vector<22x22xf32>
    %22 = tpu.matmul %6, %21, %cst_14 {dimension_numbers = #tpu.dot_dimension_numbers<[0], [0], [1], [1], [0, 1, 1, 1], [], []>} : vector<32x22xf32>, vector<32x22xf32>, vector<22x22xf32> -> vector<22x22xf32>
    %23 = arith.mulf %14, %14 : vector<22x22xf32>
    %24 = arith.mulf %16, %16 : vector<22x22xf32>
    %25 = arith.mulf %14, %16 : vector<22x22xf32>
    %26 = arith.subf %18, %23 : vector<22x22xf32>
    %27 = arith.subf %20, %24 : vector<22x22xf32>
    %28 = arith.subf %22, %25 : vector<22x22xf32>
    %cst_15 = arith.constant 2.000000e+00 : f32
    %29 = vector.broadcast %cst_15 : f32 to vector<22x22xf32>
    %30 = arith.mulf %29, %28 : vector<22x22xf32>
    %31 = vector.broadcast %1 : f32 to vector<22x22xf32>
    %32 = arith.addf %30, %31 : vector<22x22xf32>
    %33 = arith.addf %26, %27 : vector<22x22xf32>
    %34 = vector.broadcast %1 : f32 to vector<22x22xf32>
    %35 = arith.addf %33, %34 : vector<22x22xf32>
    %cst_16 = arith.constant 2.000000e+00 : f32
    %36 = vector.broadcast %cst_16 : f32 to vector<22x22xf32>
    %37 = arith.mulf %36, %25 : vector<22x22xf32>
    %38 = vector.broadcast %0 : f32 to vector<22x22xf32>
    %39 = arith.addf %37, %38 : vector<22x22xf32>
    %40 = arith.mulf %39, %32 : vector<22x22xf32>
    %41 = arith.addf %23, %24 : vector<22x22xf32>
    %42 = vector.broadcast %0 : f32 to vector<22x22xf32>
    %43 = arith.addf %41, %42 : vector<22x22xf32>
    %44 = arith.mulf %43, %35 : vector<22x22xf32>
    %45 = arith.divf %40, %44 : vector<22x22xf32>
    %46 = vector.extract_strided_slice %12 {offsets = [32, 0], sizes = [32, 22], strides = [1, 1]} : vector<480x22xf32> to vector<32x22xf32>
    %cst_17 = arith.constant dense<0.000000e+00> : vector<22x22xf32>
    %47 = tpu.matmul %6, %46, %cst_17 {dimension_numbers = #tpu.dot_dimension_numbers<[0], [0], [1], [1], [0, 1, 1, 1], [], []>} : vector<32x22xf32>, vector<32x22xf32>, vector<22x22xf32> -> vector<22x22xf32>
    %48 = vector.extract_strided_slice %12 {offsets = [128, 0], sizes = [32, 22], strides = [1, 1]} : vector<480x22xf32> to vector<32x22xf32>
    %cst_18 = arith.constant dense<0.000000e+00> : vector<22x22xf32>
    %49 = tpu.matmul %6, %48, %cst_18 {dimension_numbers = #tpu.dot_dimension_numbers<[0], [0], [1], [1], [0, 1, 1, 1], [], []>} : vector<32x22xf32>, vector<32x22xf32>, vector<22x22xf32> -> vector<22x22xf32>
    %50 = vector.extract_strided_slice %12 {offsets = [224, 0], sizes = [32, 22], strides = [1, 1]} : vector<480x22xf32> to vector<32x22xf32>
    %cst_19 = arith.constant dense<0.000000e+00> : vector<22x22xf32>
    %51 = tpu.matmul %6, %50, %cst_19 {dimension_numbers = #tpu.dot_dimension_numbers<[0], [0], [1], [1], [0, 1, 1, 1], [], []>} : vector<32x22xf32>, vector<32x22xf32>, vector<22x22xf32> -> vector<22x22xf32>
    %52 = vector.extract_strided_slice %12 {offsets = [320, 0], sizes = [32, 22], strides = [1, 1]} : vector<480x22xf32> to vector<32x22xf32>
    %cst_20 = arith.constant dense<0.000000e+00> : vector<22x22xf32>
    %53 = tpu.matmul %6, %52, %cst_20 {dimension_numbers = #tpu.dot_dimension_numbers<[0], [0], [1], [1], [0, 1, 1, 1], [], []>} : vector<32x22xf32>, vector<32x22xf32>, vector<22x22xf32> -> vector<22x22xf32>
    %54 = vector.extract_strided_slice %12 {offsets = [416, 0], sizes = [32, 22], strides = [1, 1]} : vector<480x22xf32> to vector<32x22xf32>
    %cst_21 = arith.constant dense<0.000000e+00> : vector<22x22xf32>
    %55 = tpu.matmul %6, %54, %cst_21 {dimension_numbers = #tpu.dot_dimension_numbers<[0], [0], [1], [1], [0, 1, 1, 1], [], []>} : vector<32x22xf32>, vector<32x22xf32>, vector<22x22xf32> -> vector<22x22xf32>
    %56 = arith.mulf %47, %47 : vector<22x22xf32>
    %57 = arith.mulf %49, %49 : vector<22x22xf32>
    %58 = arith.mulf %47, %49 : vector<22x22xf32>
    %59 = arith.subf %51, %56 : vector<22x22xf32>
    %60 = arith.subf %53, %57 : vector<22x22xf32>
    %61 = arith.subf %55, %58 : vector<22x22xf32>
    %cst_22 = arith.constant 2.000000e+00 : f32
    %62 = vector.broadcast %cst_22 : f32 to vector<22x22xf32>
    %63 = arith.mulf %62, %61 : vector<22x22xf32>
    %64 = vector.broadcast %1 : f32 to vector<22x22xf32>
    %65 = arith.addf %63, %64 : vector<22x22xf32>
    %66 = arith.addf %59, %60 : vector<22x22xf32>
    %67 = vector.broadcast %1 : f32 to vector<22x22xf32>
    %68 = arith.addf %66, %67 : vector<22x22xf32>
    %cst_23 = arith.constant 2.000000e+00 : f32
    %69 = vector.broadcast %cst_23 : f32 to vector<22x22xf32>
    %70 = arith.mulf %69, %58 : vector<22x22xf32>
    %71 = vector.broadcast %0 : f32 to vector<22x22xf32>
    %72 = arith.addf %70, %71 : vector<22x22xf32>
    %73 = arith.mulf %72, %65 : vector<22x22xf32>
    %74 = arith.addf %56, %57 : vector<22x22xf32>
    %75 = vector.broadcast %0 : f32 to vector<22x22xf32>
    %76 = arith.addf %74, %75 : vector<22x22xf32>
    %77 = arith.mulf %76, %68 : vector<22x22xf32>
    %78 = arith.divf %73, %77 : vector<22x22xf32>
    %79 = arith.addf %45, %78 : vector<22x22xf32>
    %80 = vector.extract_strided_slice %12 {offsets = [64, 0], sizes = [32, 22], strides = [1, 1]} : vector<480x22xf32> to vector<32x22xf32>
    %cst_24 = arith.constant dense<0.000000e+00> : vector<22x22xf32>
    %81 = tpu.matmul %6, %80, %cst_24 {dimension_numbers = #tpu.dot_dimension_numbers<[0], [0], [1], [1], [0, 1, 1, 1], [], []>} : vector<32x22xf32>, vector<32x22xf32>, vector<22x22xf32> -> vector<22x22xf32>
    %82 = vector.extract_strided_slice %12 {offsets = [160, 0], sizes = [32, 22], strides = [1, 1]} : vector<480x22xf32> to vector<32x22xf32>
    %cst_25 = arith.constant dense<0.000000e+00> : vector<22x22xf32>
    %83 = tpu.matmul %6, %82, %cst_25 {dimension_numbers = #tpu.dot_dimension_numbers<[0], [0], [1], [1], [0, 1, 1, 1], [], []>} : vector<32x22xf32>, vector<32x22xf32>, vector<22x22xf32> -> vector<22x22xf32>
    %84 = vector.extract_strided_slice %12 {offsets = [256, 0], sizes = [32, 22], strides = [1, 1]} : vector<480x22xf32> to vector<32x22xf32>
    %cst_26 = arith.constant dense<0.000000e+00> : vector<22x22xf32>
    %85 = tpu.matmul %6, %84, %cst_26 {dimension_numbers = #tpu.dot_dimension_numbers<[0], [0], [1], [1], [0, 1, 1, 1], [], []>} : vector<32x22xf32>, vector<32x22xf32>, vector<22x22xf32> -> vector<22x22xf32>
    %86 = vector.extract_strided_slice %12 {offsets = [352, 0], sizes = [32, 22], strides = [1, 1]} : vector<480x22xf32> to vector<32x22xf32>
    %cst_27 = arith.constant dense<0.000000e+00> : vector<22x22xf32>
    %87 = tpu.matmul %6, %86, %cst_27 {dimension_numbers = #tpu.dot_dimension_numbers<[0], [0], [1], [1], [0, 1, 1, 1], [], []>} : vector<32x22xf32>, vector<32x22xf32>, vector<22x22xf32> -> vector<22x22xf32>
    %88 = vector.extract_strided_slice %12 {offsets = [448, 0], sizes = [32, 22], strides = [1, 1]} : vector<480x22xf32> to vector<32x22xf32>
    %cst_28 = arith.constant dense<0.000000e+00> : vector<22x22xf32>
    %89 = tpu.matmul %6, %88, %cst_28 {dimension_numbers = #tpu.dot_dimension_numbers<[0], [0], [1], [1], [0, 1, 1, 1], [], []>} : vector<32x22xf32>, vector<32x22xf32>, vector<22x22xf32> -> vector<22x22xf32>
    %90 = arith.mulf %81, %81 : vector<22x22xf32>
    %91 = arith.mulf %83, %83 : vector<22x22xf32>
    %92 = arith.mulf %81, %83 : vector<22x22xf32>
    %93 = arith.subf %85, %90 : vector<22x22xf32>
    %94 = arith.subf %87, %91 : vector<22x22xf32>
    %95 = arith.subf %89, %92 : vector<22x22xf32>
    %cst_29 = arith.constant 2.000000e+00 : f32
    %96 = vector.broadcast %cst_29 : f32 to vector<22x22xf32>
    %97 = arith.mulf %96, %95 : vector<22x22xf32>
    %98 = vector.broadcast %1 : f32 to vector<22x22xf32>
    %99 = arith.addf %97, %98 : vector<22x22xf32>
    %100 = arith.addf %93, %94 : vector<22x22xf32>
    %101 = vector.broadcast %1 : f32 to vector<22x22xf32>
    %102 = arith.addf %100, %101 : vector<22x22xf32>
    %cst_30 = arith.constant 2.000000e+00 : f32
    %103 = vector.broadcast %cst_30 : f32 to vector<22x22xf32>
    %104 = arith.mulf %103, %92 : vector<22x22xf32>
    %105 = vector.broadcast %0 : f32 to vector<22x22xf32>
    %106 = arith.addf %104, %105 : vector<22x22xf32>
    %107 = arith.mulf %106, %99 : vector<22x22xf32>
    %108 = arith.addf %90, %91 : vector<22x22xf32>
    %109 = vector.broadcast %0 : f32 to vector<22x22xf32>
    %110 = arith.addf %108, %109 : vector<22x22xf32>
    %111 = arith.mulf %110, %102 : vector<22x22xf32>
    %112 = arith.divf %107, %111 : vector<22x22xf32>
    %113 = arith.addf %79, %112 : vector<22x22xf32>
    %cst_31 = arith.constant dense<0.000000e+00> : vector<22xf32>
    %114 = vector.multi_reduction <add>, %113, %cst_31 [1] : vector<22x22xf32> to vector<22xf32>
    %115 = vector.shape_cast %114 : vector<22xf32> to vector<22x1xf32>
    %cst_32 = arith.constant dense<0.000000e+00> : vector<1xf32>
    %116 = vector.multi_reduction <add>, %115, %cst_32 [0] : vector<22x1xf32> to vector<1xf32>
    %117 = vector.shape_cast %116 : vector<1xf32> to vector<1x1xf32>
    %118 = vector.shape_cast %117 : vector<1x1xf32> to vector<1x1x1xf32>
    %c0_33 = arith.constant 0 : index
    %c0_34 = arith.constant 0 : index
    %c0_35 = arith.constant 0 : index
    %119 = vector.load %arg6[%c0_33, %c0_34, %c0_35] : memref<1x1x1xf32, #tpu.memory_space<vmem>>, vector<1x1x1xf32>
    tpu.vector_store %arg6[%c0_33, %c0_34, %c0_35], %118 {strides = array<i32>} : memref<1x1x1xf32, #tpu.memory_space<vmem>>, vector<1x1x1xf32>,
    return
  }
  func.func @transform_0(%arg0: i32) -> i32 {
    %c0_i32 = arith.constant 0 : i32
    %c0_i32_0 = arith.constant 0 : i32
    return %c0_i32 : i32
  }
  func.func @transform_1(%arg0: i32) -> (i32, i32, i32) {
    %c0_i32 = arith.constant 0 : i32
    %c0_i32_0 = arith.constant 0 : i32
    %c0_i32_1 = arith.constant 0 : i32
    return %arg0, %c0_i32, %c0_i32_0 : i32, i32, i32
  }
  func.func @transform_2(%arg0: i32) -> (i32, i32, i32) {
    %c0_i32 = arith.constant 0 : i32
    %c0_i32_0 = arith.constant 0 : i32
    %c0_i32_1 = arith.constant 0 : i32
    return %arg0, %c0_i32, %c0_i32_0 : i32, i32, i32
  }
  func.func @transform_3(%arg0: i32) -> (i32, i32) {
    %c0_i32 = arith.constant 0 : i32
    %c0_i32_0 = arith.constant 0 : i32
    %c0_i32_1 = arith.constant 0 : i32
    return %c0_i32, %c0_i32_0 : i32, i32
  }
  func.func @transform_4(%arg0: i32) -> (i32, i32) {
    %c0_i32 = arith.constant 0 : i32
    %c0_i32_0 = arith.constant 0 : i32
    %c0_i32_1 = arith.constant 0 : i32
    return %c0_i32, %c0_i32_0 : i32, i32
  }
  func.func @transform_5(%arg0: i32) -> (i32, i32, i32) {
    %c0_i32 = arith.constant 0 : i32
    %c0_i32_0 = arith.constant 0 : i32
    %c0_i32_1 = arith.constant 0 : i32
    return %arg0, %c0_i32, %c0_i32_0 : i32, i32, i32
  }
}

</mosaic_0001>

<bundles_post_ra>
// kernel: tpu_custom_call.1
= control target key start
LH: loop header
LB: loop body
LE: loop exit
PB: predicated region body
PF: predicated region fallthrough
CT: control target
= control target key end

     0   :  { %10 = vsyncpa [#allocation3], 0  ;;  %s3219_s18 = smov 0   ;;  %s3946_s0 = inlined_call_operand.vmem [shape: f32[2], index: 0, kind: input, shape index: {}]   ;;  %s3947_s1 = inlined_call_operand.vmem [shape: f32[2,96,32], index: 1, kind: input, shape index: {}]   ;;  %s3948_s2 = inlined_call_operand.vmem [shape: f32[2,96,32], index: 2, kind: input, shape index: {}]   ;;  %s3949_s3 = inlined_call_operand.vmem [shape: f32[32,22], index: 3, kind: input, shape index: {}]   ;;  %s3950_s4 = inlined_call_operand.vmem [shape: f32[32,22], index: 4, kind: input, shape index: {}]   ;;  %s3951_s5 = inlined_call_operand.vmem [shape: f32[2,1,1], index: 5, kind: output, shape index: {}]  }
   0x1 LB: > { %s3225_s19 = sadd.s32 4294967295, %s3183_s18   ;;  %p2378_p0 = scmp.ge.s32.totalorder %s3183_s18, 1  ;;  %s3183_s18 = sphi %s3219_s18, %s16_s18  }
   0x2   : > { %p162_p1 = scmp.lt.s32.totalorder %s3183_s18, 3  ;;  %s175_s22 = sshll.u32 %s3946_s0, 4  ;;  %s176_s22 = int_to_ptr.vmem [resolvable:$true] %s175_s22 }
   0x3   : > { %p3126_p3 = scmp.eq.s32.totalorder %s3225_s19, 0  ;;  %s3158_s24 = scalar_lea.vmem %s176_s22, 16 }
   0x4   : > { %p3232_p2 = pnand %p2378_p0, %p162_p1  ;;  %p3159_p6 = scmp.ne.s32.totalorder %s176_s22, %s3158_s24 }
   0x5   : > { %p3166_p10 = scmp.lt.s32.totalorder %s176_s22, %s176_s22  ;;  %p3167_p11 = scmp.lt.s32.totalorder %s3158_s24, %s3158_s24 }
   0x6   : > { %p3122_p4 = pneg %p3232_p2 }
   0x7   : > { %p3168_p12 = por %p3167_p11, %p3166_p10 }
   0x8   : > { %p3123_p5 = pnand %p3126_p3, %p3122_p4 }
   0xa   : > { %p3160_p7 = pneg %p3123_p5 }
   0xc   : > { %p3161_p8 = pnand %p3160_p7, %p3159_p6 }
   0xe   : > { %p3162_p9 = pneg %p3161_p8 }
  0x10   : > { %p3169_p13 = pnand %p3168_p12, %p3162_p9 }
  0x12   : > { %3172 = shalt.err (!%p3169_p13)
}
  0x13   : > { %s3185_s25 = smov [#allocation2]   ;;  %210 = sbr.rel (%p3232_p2) target bundleno = 852 (0x354), region = 40 }
  0x14   : > { %3125 = dma.vmem_to_smem (!%p3123_p5), %s176_s22, 16, %s3185_s25, [#allocation3]  }
  0x1a   : > { %3178 = dma.done.wait (%p3126_p3), [#allocation3], 16  }
  0x1b   : > { %3180 = vsyncadd (%p3126_p3), [#allocation3], 4294967280 }
  0x1c   : > { %216 = sfence }
  0x1d   : > { %v285_v0 = vld [vmem:[%s3950_s4] sm:$0xff]  ;;  %v286_v1 = vld [vmem:[%s3950_s4 + $0x8] sm:$0xff]  ;;  %v287_v2 = vld [vmem:[%s3950_s4 + $0x10] sm:$0xff]  ;;  %p242_p0 = scmp.lt.s32.totalorder %s3225_s19, 1  ;;  %vm325_vm0 = vcmask 261120   ;;  %vm3187_vm1 = vmmov 0  }
  0x1e   : > { %v3015_v3 = vpack.c.bf16 %v286_v1, %v285_v0  ;;  %v288_v4 = vld [vmem:[%s3950_s4 + $0x18] sm:$0xff]  ;;  %v281_v5 = vld [vmem:[%s3949_s3] sm:$0xff]  ;;  %v282_v7 = vld [vmem:[%s3949_s3 + $0x8] sm:$0xff]  ;;  %s255_s26 = sld [smem:[#allocation2]]  ;;  %s2385_s27 = sld [smem:[#allocation2 + $0x1]]  ;;  %vm2282_vm2 = vcmask 179200  }
  0x1f   : > { %v3019_v6 = vpack.c.bf16 %v288_v4, %v287_v2  ;;  %s3954_s19 = smov (!%p242_p0, %s3225_s19), 1  ;;  %871 = vxpose.xlu0.b32.start [1/4] (short) (narrow) %v281_v5, 24  ;;  %v283_v9 = vld [vmem:[%s3949_s3 + $0x10] sm:$0xff]  ;;  %v284_v13 = vld [vmem:[%s3949_s3 + $0x18] sm:$0xff]  ;;  %v3186_v5 = vmov 0.0|0.0   ;;  %vm2289_vm3 = vcmask 177152  }
  0x20   : > { %3016 = vmatprep.subr.bf16.mxu0 %v3015_v3  ;;  %s3117_s13 = smul.u32 96, %s3954_s19  ;;  %3023 = vmatprep.subr.bf16.mxu1 %v3186_v5  ;;  %vm2294_vm4 = vcmask 1045504   ;;  %s254_s30 = scalar_lea.vmem %s3951_s5, %s3954_s19  ;;  %vm2303_vm5 = vcmask 0  }
  0x21   : > { %3018 = vmatpush3.bf16.msra.mxu0 %v3015_v3 }
  0x22   : > { %3020 = vmatprep.subr.bf16.mxu0 %v3019_v6  ;;  %s3273_s16 = scalar_lea.vmem %s3947_s1, %s3117_s13  ;;  %s3287_s23 = scalar_lea.vmem %s3948_s2, %s3117_s13 }
  0x23   : > { %872 = vxpose.xlu0.b32.cont [2/4] (short) (narrow) %v282_v7, 24  ;;  %v3276_v8 = vld [vmem:[%s3273_s16] sm:$0xff]  ;;  %v258_v10 = vld [vmem:[%s3273_s16 + $0x8] sm:$0xff]  ;;  %v259_v11 = vld [vmem:[%s3273_s16 + $0x10] sm:$0xff]  ;;  %v3188_v7 = vmov 0.0  }
  0x24   : > { %2670 = vmatprep.mubr.msk.f32.mxu0 %vm325_vm0, %v3276_v8  ;;  %v3291_v12 = vld [vmem:[%s3273_s16 + $0x18] sm:$0xff]  ;;  %v261_v14 = vld [vmem:[%s3273_s16 + $0x20] sm:$0xff]  ;;  %v262_v15 = vld [vmem:[%s3273_s16 + $0x28] sm:$0xff]  ;;  %v289_v46 = vmul.f32 %v3276_v8, %v3276_v8  ;;  %v290_v47 = vmul.f32 %v258_v10, %v258_v10  ;;  %v291_v48 = vmul.f32 %v259_v11, %v259_v11  ;;  %2768 = vmatprep.mubr.msk.f32.mxu1 %vm3187_vm1, %v3188_v7 }
  0x25   : > { %3022 = vmatpush3.bf16.msra.mxu0 %v3019_v6  ;;  %v3300_v16 = vld [vmem:[%s3287_s23] sm:$0xff]  ;;  %v3303_v17 = vld [vmem:[%s3287_s23 + $0x8] sm:$0xff]  ;;  %v263_v18 = vld [vmem:[%s3273_s16 + $0x30] sm:$0xff]  ;;  %v292_v49 = vmul.f32 %v3291_v12, %v3291_v12  ;;  %v293_v50 = vmul.f32 %v261_v14, %v261_v14  ;;  %v294_v51 = vmul.f32 %v262_v15, %v262_v15 }
  0x26   : > { %v264_v19 = vld [vmem:[%s3273_s16 + $0x38] sm:$0xff]  ;;  %v3310_v20 = vmul.f32 %v3300_v16, %v3276_v8  ;;  %v3313_v21 = vmul.f32 %v3303_v17, %v258_v10  ;;  %v3316_v22 = vld [vmem:[%s3287_s23 + $0x10] sm:$0xff]  ;;  %v265_v24 = vld [vmem:[%s3273_s16 + $0x40] sm:$0xff]  ;;  %v295_v52 = vmul.f32 %v263_v18, %v263_v18  ;;  %v301_v58 = vmul.f32 %v3300_v16, %v3300_v16  ;;  %3083 = vmatprep.subr.bf16.mxu0 %v3186_v5 }
  0x27   : > { %873 = vxpose.xlu0.b32.cont [3/4] (short) (narrow) %v283_v9, 24  ;;  %v3319_v23 = vld [vmem:[%s3287_s23 + $0x18] sm:$0xff]  ;;  %v3323_v25 = vmul.f32 %v3316_v22, %v259_v11  ;;  %v3330_v27 = vld [vmem:[%s3287_s23 + $0x20] sm:$0xff]  ;;  %v3333_v28 = vld [vmem:[%s3287_s23 + $0x28] sm:$0xff]  ;;  %v296_v53 = vmul.f32 %v264_v19, %v264_v19  ;;  %v297_v54 = vmul.f32 %v265_v24, %v265_v24  ;;  %v302_v59 = vmul.f32 %v3303_v17, %v3303_v17 }
  0x28   : > { %2671 = vmatmul.mubr.msk.f32.vlgmr.msra.gmra.mrb[0].mxu0 %vm325_vm0, %v258_v10  ;;  %v3327_v26 = vmul.f32 %v3319_v23, %v3291_v12  ;;  %v266_v29 = vld [vmem:[%s3273_s16 + $0x48] sm:$0xff]  ;;  %v3337_v30 = vmul.f32 %v3330_v27, %v261_v14  ;;  %v3340_v31 = vmul.f32 %v3333_v28, %v262_v15  ;;  %v3343_v32 = vld [vmem:[%s3287_s23 + $0x30] sm:$0xff]  ;;  %v3346_v33 = vld [vmem:[%s3287_s23 + $0x38] sm:$0xff]  ;;  %v303_v60 = vmul.f32 %v3316_v22, %v3316_v22 }
  0x29   : > { %2673 = vmatprep.mubr.msk.f32.mxu0 %vm325_vm0, %v259_v11  ;;  %v267_v34 = vld [vmem:[%s3273_s16 + $0x50] sm:$0xff]  ;;  %v3352_v35 = vmul.f32 %v3343_v32, %v263_v18  ;;  %v3355_v36 = vmul.f32 %v3346_v33, %v264_v19  ;;  %v3358_v37 = vld [vmem:[%s3287_s23 + $0x40] sm:$0xff]  ;;  %v3361_v38 = vld [vmem:[%s3287_s23 + $0x48] sm:$0xff]  ;;  %v298_v55 = vmul.f32 %v266_v29, %v266_v29  ;;  %v304_v61 = vmul.f32 %v3319_v23, %v3319_v23 }
  0x2a   : > { %v268_v39 = vld [vmem:[%s3273_s16 + $0x58] sm:$0xff]  ;;  %v3366_v40 = vmul.f32 %v3358_v37, %v265_v24  ;;  %v3369_v41 = vmul.f32 %v3361_v38, %v266_v29  ;;  %v3372_v42 = vld [vmem:[%s3287_s23 + $0x50] sm:$0xff]  ;;  %v299_v56 = vmul.f32 %v267_v34, %v267_v34  ;;  %v305_v62 = vmul.f32 %v3330_v27, %v3330_v27 }
  0x2b   : > { %874 = vxpose.xlu0.b32.end [4/4] (short) (narrow) %v284_v13, 24  ;;  %v3375_v43 = vld [vmem:[%s3287_s23 + $0x58] sm:$0xff]  ;;  %v3378_v44 = vmul.f32 %v3372_v42, %v267_v34  ;;  %v300_v57 = vmul.f32 %v268_v39, %v268_v39  ;;  %v306_v63 = vmul.f32 %v3333_v28, %v3333_v28  ;;  %v307_v0 = vmul.f32 %v3343_v32, %v3343_v32 }
  0x2c   : > { %2674 = vmatmul.mubr.msk.f32.gmra.mrb[2].mxu0 %vm325_vm0, %v3291_v12  ;;  %v3381_v45 = vmul.f32 %v3375_v43, %v268_v39  ;;  %v308_v1 = vmul.f32 %v3346_v33, %v3346_v33  ;;  %v309_v2 = vmul.f32 %v3358_v37, %v3358_v37  ;;  %v310_v3 = vmul.f32 %v3361_v38, %v3361_v38 }
  0x2d   : > { %2676 = vmatprep.mubr.msk.f32.mxu0 %vm325_vm0, %v261_v14  ;;  %v311_v4 = vmul.f32 %v3372_v42, %v3372_v42  ;;  %v312_v6 = vmul.f32 %v3375_v43, %v3375_v43 }
  0x30   : > { %2677 = vmatmul.mubr.msk.f32.gmra.mrb[4].mxu0 %vm325_vm0, %v262_v15 }
  0x31   : > { %2679 = vmatprep.mubr.msk.f32.mxu0 %vm325_vm0, %v263_v18 }
  0x34   : > { %2680 = vmatmul.mubr.msk.f32.gmra.mrb[6].mxu0 %vm325_vm0, %v264_v19 }
  0x35   : > { %2682 = vmatprep.mubr.msk.f32.mxu0 %vm325_vm0, %v265_v24 }
  0x38   : > { %2683 = vmatmul.mubr.msk.f32.gmra.mrb[8].mxu0 %vm325_vm0, %v266_v29 }
  0x39   : > { %2685 = vmatprep.mubr.msk.f32.mxu0 %vm325_vm0, %v267_v34 }
  0x3c   : > { %2686 = vmatmul.mubr.msk.f32.gmra.mrb[10].mxu0 %vm325_vm0, %v268_v39 }
  0x3d   : > { %2688 = vmatprep.mubr.msk.f32.mxu0 %vm325_vm0, %v3300_v16 }
  0x40   : > { %2689 = vmatmul.mubr.msk.f32.gmra.mrb[12].mxu0 %vm325_vm0, %v3303_v17 }
  0x41   : > { %2691 = vmatprep.mubr.msk.f32.mxu0 %vm325_vm0, %v3316_v22 }
  0x44   : > { %2692 = vmatmul.mubr.msk.f32.gmra.mrb[14].mxu0 %vm325_vm0, %v3319_v23 }
  0x45   : > { %2694 = vmatprep.mubr.msk.f32.mxu0 %vm325_vm0, %v3330_v27 }
  0x48   : > { %2695 = vmatmul.mubr.msk.f32.gmra.mrb[16].mxu0 %vm325_vm0, %v3333_v28 }
  0x49   : > { %2697 = vmatprep.mubr.msk.f32.mxu0 %vm325_vm0, %v3343_v32 }
  0x4c   : > { %2698 = vmatmul.mubr.msk.f32.gmra.mrb[18].mxu0 %vm325_vm0, %v3346_v33 }
  0x4d   : > { %2700 = vmatprep.mubr.msk.f32.mxu0 %vm325_vm0, %v3358_v37 }
  0x50   : > { %2701 = vmatmul.mubr.msk.f32.gmra.mrb[20].mxu0 %vm325_vm0, %v3361_v38 }
  0x51   : > { %2703 = vmatprep.mubr.msk.f32.mxu0 %vm325_vm0, %v3372_v42 }
  0x54   : > { %2704 = vmatmul.mubr.msk.f32.gmra.mrb[22].mxu0 %vm325_vm0, %v3375_v43 }
  0x55   : > { %2706 = vmatprep.mubr.msk.f32.mxu0 %vm325_vm0, %v289_v46 }
  0x58   : > { %2707 = vmatmul.mubr.msk.f32.gmra.mrb[24].mxu0 %vm325_vm0, %v290_v47 }
  0x59   : > { %2709 = vmatprep.mubr.msk.f32.mxu0 %vm325_vm0, %v291_v48 }
  0x5c   : > { %2710 = vmatmul.mubr.msk.f32.gmra.mrb[26].mxu0 %vm325_vm0, %v292_v49 }
  0x5d   : > { %2712 = vmatprep.mubr.msk.f32.mxu0 %vm325_vm0, %v293_v50 }
  0x60   : > { %2713 = vmatmul.mubr.msk.f32.gmra.mrb[28].mxu0 %vm325_vm0, %v294_v51 }
  0x61   : > { %2715 = vmatprep.mubr.msk.f32.mxu0 %vm325_vm0, %v295_v52 }
  0x64   : > { %2716 = vmatmul.mubr.msk.f32.gmra.mrb[30].mxu0 %vm325_vm0, %v296_v53 }
  0x65   : > { %2718 = vmatprep.mubr.msk.f32.mxu0 %vm325_vm0, %v297_v54 }
  0x68   : > { %2719 = vmatmul.mubr.msk.f32.gmra.mrb[32].mxu0 %vm325_vm0, %v298_v55 }
  0x69   : > { %2721 = vmatprep.mubr.msk.f32.mxu0 %vm325_vm0, %v299_v56 }
  0x6c   : > { %2722 = vmatmul.mubr.msk.f32.gmra.mrb[34].mxu0 %vm325_vm0, %v300_v57 }
  0x6d   : > { %2724 = vmatprep.mubr.msk.f32.mxu0 %vm325_vm0, %v301_v58 }
  0x70   : > { %2725 = vmatmul.mubr.msk.f32.gmra.mrb[36].mxu0 %vm325_vm0, %v302_v59 }
  0x71   : > { %2727 = vmatprep.mubr.msk.f32.mxu0 %vm325_vm0, %v303_v60 }
  0x74   : > { %2728 = vmatmul.mubr.msk.f32.gmra.mrb[38].mxu0 %vm325_vm0, %v304_v61 }
  0x75   : > { %2730 = vmatprep.mubr.msk.f32.mxu0 %vm325_vm0, %v305_v62 }
  0x78   : > { %2731 = vmatmul.mubr.msk.f32.gmra.mrb[40].mxu0 %vm325_vm0, %v306_v63 }
  0x79   : > { %2733 = vmatprep.mubr.msk.f32.mxu0 %vm325_vm0, %v307_v0 }
  0x7c   : > { %2734 = vmatmul.mubr.msk.f32.gmra.mrb[42].mxu0 %vm325_vm0, %v308_v1 }
  0x7d   : > { %2736 = vmatprep.mubr.msk.f32.mxu0 %vm325_vm0, %v309_v2 }
  0x80   : > { %2737 = vmatmul.mubr.msk.f32.gmra.mrb[44].mxu0 %vm325_vm0, %v310_v3 }
  0x81   : > { %2739 = vmatprep.mubr.msk.f32.mxu0 %vm325_vm0, %v311_v4 }
  0x84   : > { %2740 = vmatmul.mubr.msk.f32.gmra.mrb[46].mxu0 %vm325_vm0, %v312_v6 }
  0x85   : > { %2742 = vmatprep.mubr.msk.f32.mxu0 %vm325_vm0, %v3310_v20 }
  0x88   : > { %2743 = vmatmul.mubr.msk.f32.gmra.mrb[48].mxu0 %vm325_vm0, %v3313_v21 }
  0x89   : > { %2745 = vmatprep.mubr.msk.f32.mxu0 %vm325_vm0, %v3323_v25 }
  0x8c   : > { %2746 = vmatmul.mubr.msk.f32.gmra.mrb[50].mxu0 %vm325_vm0, %v3327_v26 }
  0x8d   : > { %2748 = vmatprep.mubr.msk.f32.mxu0 %vm325_vm0, %v3337_v30 }
  0x90   : > { %2749 = vmatmul.mubr.msk.f32.gmra.mrb[52].mxu0 %vm325_vm0, %v3340_v31 }
  0x91   : > { %2751 = vmatprep.mubr.msk.f32.mxu0 %vm325_vm0, %v3352_v35 }
  0x94   : > { %2752 = vmatmul.mubr.msk.f32.gmra.mrb[54].mxu0 %vm325_vm0, %v3355_v36 }
  0x95   : > { %2754 = vmatprep.mubr.msk.f32.mxu0 %vm325_vm0, %v3366_v40 }
  0x98   : > { %2755 = vmatmul.mubr.msk.f32.gmra.mrb[56].mxu0 %vm325_vm0, %v3369_v41 }
  0x99   : > { %2757 = vmatprep.mubr.msk.f32.mxu0 %vm325_vm0, %v3378_v44 }
  0x9c   : > { %2758 = vmatmul.mubr.msk.f32.gmra.mrb[58].mxu0 %vm325_vm0, %v3381_v45 }
  0x9d   : > { %2938 = vmatprep.mubr.msk.f32.mxu0 %vm3187_vm1, %v3188_v7 }
  0x9f   : > { %v3497_v14 = vpop.trf.xlu0 }
  0xa3   : > { %v3506_v18 = vpop.trf.xlu0 }
  0xa7   : > { %v3520_v23 = vpop.trf.xlu0 }
  0xfb   : > { %v2672_v8 = vpop.f32.mrb[0].mxu0 }
  0xfc   : > { %v572_v9 = vpop.f32.mrb[1].mxu0 }
  0xfd   : > { %v3024_v10 = vpack.c.bf16 %v2672_v8, %v572_v9 }
  0xff   : > { %v2675_v11 = vpop.f32.mrb[2].mxu0  ;;  %3025 = vmatpush3.bf16.msra.mxu1 %v3024_v10 }
 0x100   : > { %v582_v12 = vpop.f32.mrb[3].mxu0  ;;  %3026 = vmatprep.subr.bf16.mxu1 %v3186_v5 }
 0x101   : > { %v3027_v13 = vpack.c.bf16 %v2675_v11, %v582_v12 }
 0x103   : > { %v3499_v15 = vpop.f32.mrb[4].mxu0  ;;  %3028 = vmatpush3.bf16.msra.mxu1 %v3027_v13 }
 0x104   : > { %v3501_v16 = vpop.f32.mrb[5].mxu0  ;;  %3029 = vmatprep.subr.bf16.mxu1 %v3186_v5 }
 0x105   : > { %v3054_v17 = vpack.c.bf16 %v3499_v15, %v3501_v16 }
 0x106   : > { %2769 = vmatmul.mubr.msk.f32.vlgmr.msra.gmra.mrb[0].mxu1 %vm325_vm0, %v3497_v14 }
 0x107   : > { %v3510_v19 = vpop.f32.mrb[6].mxu0  ;;  %2771 = vmatprep.mubr.msk.f32.mxu1 %vm3187_vm1, %v3188_v7 }
 0x108   : > { %v3514_v20 = vpop.f32.mrb[7].mxu0 }
 0x109   : > { %v3057_v21 = vpack.c.bf16 %v3510_v19, %v3514_v20 }
 0x10a   : > { %2772 = vmatmul.mubr.msk.f32.gmra.mrb[2].mxu1 %vm325_vm0, %v3506_v18 }
 0x10b   : > { %v2684_v22 = vpop.f32.mrb[8].mxu0  ;;  %2774 = vmatprep.mubr.msk.f32.mxu1 %vm3187_vm1, %v3188_v7 }
 0x10c   : > { %v612_v24 = vpop.f32.mrb[9].mxu0 }
 0x10d   : > { %v3524_v25 = vpack.c.bf16 %v2684_v22, %v612_v24 }
 0x10e   : > { %2775 = vmatmul.mubr.msk.f32.gmra.mrb[4].mxu1 %vm325_vm0, %v3520_v23 }
 0x10f   : > { %v2687_v26 = vpop.f32.mrb[10].mxu0  ;;  %3085 = vmatpush3.bf16.msra.mxu0 %v3524_v25  ;;  %2785 = vmatprep.mubr.msk.f32.mxu1 %vm3187_vm1, %v3188_v7 }
 0x110   : > { %v622_v27 = vpop.f32.mrb[11].mxu0  ;;  %3086 = vmatprep.subr.bf16.mxu0 %v3186_v5 }
 0x111   : > { %v3532_v28 = vpack.c.bf16 %v2687_v26, %v622_v27 }
 0x113   : > { %v2690_v29 = vpop.f32.mrb[12].mxu0  ;;  %3088 = vmatpush3.bf16.msra.mxu0 %v3532_v28 }
 0x114   : > { %v632_v30 = vpop.f32.mrb[13].mxu0  ;;  %3095 = vmatprep.subr.bf16.mxu0 %v3186_v5 }
 0x115   : > { %v3030_v31 = vpack.c.bf16 %v2690_v29, %v632_v30 }
 0x116   : > { %2939 = vmatmul.mubr.msk.f32.vlgmr.msra.gmra.mrb[60].mxu0 %vm325_vm0, %v3497_v14 }
 0x117   : > { %v2693_v32 = vpop.f32.mrb[14].mxu0  ;;  %3031 = vmatpush3.bf16.msra.mxu1 %v3030_v31  ;;  %2941 = vmatprep.mubr.msk.f32.mxu0 %vm3187_vm1, %v3188_v7 }
 0x118   : > { %v642_v33 = vpop.f32.mrb[15].mxu0  ;;  %3032 = vmatprep.subr.bf16.mxu1 %v3186_v5 }
 0x119   : > { %v3033_v34 = vpack.c.bf16 %v2693_v32, %v642_v33 }
 0x11a   : > { %2942 = vmatmul.mubr.msk.f32.gmra.mrb[62].mxu0 %vm325_vm0, %v3506_v18 }
 0x11b   : > { %v3543_v35 = vpop.f32.mrb[16].mxu0  ;;  %3034 = vmatpush3.bf16.msra.mxu1 %v3033_v34  ;;  %2972 = vmatprep.mubr.msk.f32.mxu0 %vm3187_vm1, %v3188_v7 }
 0x11c   : > { %v3547_v36 = vpop.f32.mrb[17].mxu0  ;;  %3035 = vmatprep.subr.bf16.mxu1 %v3186_v5 }
 0x11d   : > { %v3060_v37 = vpack.c.bf16 %v3543_v35, %v3547_v36 }
 0x11e   : > { %2786 = vmatmul.mubr.msk.f32.vlgmr.msra.gmra.mrb[6].mxu1 %vm325_vm0, %v3497_v14 }
 0x11f   : > { %v3554_v38 = vpop.f32.mrb[18].mxu0  ;;  %2788 = vmatprep.mubr.msk.f32.mxu1 %vm3187_vm1, %v3188_v7 }
 0x120   : > { %v3558_v39 = vpop.f32.mrb[19].mxu0 }
 0x121   : > { %v3063_v40 = vpack.c.bf16 %v3554_v38, %v3558_v39 }
 0x122   : > { %2789 = vmatmul.mubr.msk.f32.gmra.mrb[8].mxu1 %vm325_vm0, %v3506_v18 }
 0x123   : > { %v3564_v41 = vpop.f32.mrb[20].mxu0  ;;  %2791 = vmatprep.mubr.msk.f32.mxu1 %vm3187_vm1, %v3188_v7 }
 0x124   : > { %v3568_v42 = vpop.f32.mrb[21].mxu0 }
 0x125   : > { %v3090_v43 = vpack.c.bf16 %v3564_v41, %v3568_v42 }
 0x126   : > { %2792 = vmatmul.mubr.msk.f32.gmra.mrb[10].mxu1 %vm325_vm0, %v3520_v23 }
 0x127   : > { %v3574_v44 = vpop.f32.mrb[22].mxu0  ;;  %2802 = vmatprep.mubr.msk.f32.mxu1 %vm3187_vm1, %v3188_v7 }
 0x128   : > { %v3578_v45 = vpop.f32.mrb[23].mxu0 }
 0x129   : > { %v3093_v46 = vpack.c.bf16 %v3574_v44, %v3578_v45 }
 0x12b   : > { %v2708_v47 = vpop.f32.mrb[24].mxu0 }
 0x12c   : > { %v692_v48 = vpop.f32.mrb[25].mxu0 }
 0x12d   : > { %v3036_v49 = vpack.c.bf16 %v2708_v47, %v692_v48 }
 0x12f   : > { %v2711_v50 = vpop.f32.mrb[26].mxu0  ;;  %3037 = vmatpush3.bf16.msra.mxu1 %v3036_v49 }
 0x130   : > { %v702_v51 = vpop.f32.mrb[27].mxu0  ;;  %3038 = vmatprep.subr.bf16.mxu1 %v3186_v5 }
 0x131   : > { %v3039_v52 = vpack.c.bf16 %v2711_v50, %v702_v51 }
 0x133   : > { %v3583_v53 = vpop.f32.mrb[28].mxu0  ;;  %3040 = vmatpush3.bf16.msra.mxu1 %v3039_v52 }
 0x134   : > { %v3585_v54 = vpop.f32.mrb[29].mxu0  ;;  %3041 = vmatprep.subr.bf16.mxu1 %v3186_v5 }
 0x135   : > { %v3066_v55 = vpack.c.bf16 %v3583_v53, %v3585_v54 }
 0x136   : > { %2803 = vmatmul.mubr.msk.f32.vlgmr.msra.gmra.mrb[12].mxu1 %vm325_vm0, %v3497_v14 }
 0x137   : > { %v3592_v56 = vpop.f32.mrb[30].mxu0  ;;  %2805 = vmatprep.mubr.msk.f32.mxu1 %vm3187_vm1, %v3188_v7 }
 0x138   : > { %v3596_v57 = vpop.f32.mrb[31].mxu0 }
 0x139   : > { %v3069_v58 = vpack.c.bf16 %v3592_v56, %v3596_v57 }
 0x13a   : > { %2806 = vmatmul.mubr.msk.f32.gmra.mrb[14].mxu1 %vm325_vm0, %v3506_v18 }
 0x13b   : > { %v2720_v59 = vpop.f32.mrb[32].mxu0  ;;  %2808 = vmatprep.mubr.msk.f32.mxu1 %vm3187_vm1, %v3188_v7 }
 0x13c   : > { %v732_v60 = vpop.f32.mrb[33].mxu0 }
 0x13d   : > { %v3096_v61 = vpack.c.bf16 %v2720_v59, %v732_v60 }
 0x13e   : > { %2809 = vmatmul.mubr.msk.f32.gmra.mrb[16].mxu1 %vm325_vm0, %v3520_v23 }
 0x13f   : > { %v2723_v62 = vpop.f32.mrb[34].mxu0  ;;  %3097 = vmatpush3.bf16.msra.mxu0 %v3096_v61  ;;  %2819 = vmatprep.mubr.msk.f32.mxu1 %vm3187_vm1, %v3188_v7 }
 0x140   : > { %v742_v63 = vpop.f32.mrb[35].mxu0  ;;  %3098 = vmatprep.subr.bf16.mxu0 %v3186_v5 }
 0x141   : > { %v3099_v0 = vpack.c.bf16 %v2723_v62, %v742_v63 }
 0x143   : > { %v2726_v1 = vpop.f32.mrb[36].mxu0  ;;  %3100 = vmatpush3.bf16.msra.mxu0 %v3099_v0 }
 0x144   : > { %v752_v2 = vpop.f32.mrb[37].mxu0  ;;  %3107 = vmatprep.subr.bf16.mxu0 %v3186_v5 }
 0x145   : > { %v3042_v3 = vpack.c.bf16 %v2726_v1, %v752_v2 }
 0x146   : > { %2973 = vmatmul.mubr.msk.f32.vlgmr.msra.gmra.mrb[64].mxu0 %vm325_vm0, %v3497_v14 }
 0x147   : > { %v2729_v4 = vpop.f32.mrb[38].mxu0  ;;  %3043 = vmatpush3.bf16.msra.mxu1 %v3042_v3  ;;  %2975 = vmatprep.mubr.msk.f32.mxu0 %vm3187_vm1, %v3188_v7 }
 0x148   : > { %v762_v6 = vpop.f32.mrb[39].mxu0  ;;  %3044 = vmatprep.subr.bf16.mxu1 %v3186_v5 }
 0x149   : > { %v3045_v8 = vpack.c.bf16 %v2729_v4, %v762_v6 }
 0x14a   : > { %2976 = vmatmul.mubr.msk.f32.gmra.mrb[66].mxu0 %vm325_vm0, %v3506_v18 }
 0x14b   : > { %v3617_v9 = vpop.f32.mrb[40].mxu0  ;;  %3046 = vmatpush3.bf16.msra.mxu1 %v3045_v8  ;;  %2978 = vmatprep.mubr.msk.f32.mxu0 %vm3187_vm1, %v3188_v7 }
 0x14c   : > { %v3621_v10 = vpop.f32.mrb[41].mxu0  ;;  %3047 = vmatprep.subr.bf16.mxu1 %v3186_v5 }
 0x14d   : > { %v3072_v11 = vpack.c.bf16 %v3617_v9, %v3621_v10 }
 0x14e   : > { %2820 = vmatmul.mubr.msk.f32.vlgmr.msra.gmra.mrb[18].mxu1 %vm325_vm0, %v3497_v14  ;;  %2979 = vmatmul.mubr.msk.f32.gmra.mrb[68].mxu0 %vm325_vm0, %v3520_v23 }
 0x14f   : > { %v3630_v12 = vpop.f32.mrb[42].mxu0  ;;  %2822 = vmatprep.mubr.msk.f32.mxu1 %vm3187_vm1, %v3188_v7  ;;  %3006 = vmatprep.mubr.msk.f32.mxu0 %vm3187_vm1, %v3188_v7 }
 0x150   : > { %v3636_v13 = vpop.f32.mrb[43].mxu0 }
 0x151   : > { %v3075_v22 = vpack.c.bf16 %v3630_v12, %v3636_v13 }
 0x152   : > { %2823 = vmatmul.mubr.msk.f32.gmra.mrb[20].mxu1 %vm325_vm0, %v3506_v18 }
 0x153   : > { %v3642_v24 = vpop.f32.mrb[44].mxu0  ;;  %2825 = vmatprep.mubr.msk.f32.mxu1 %vm3187_vm1, %v3188_v7 }
 0x154   : > { %v3646_v26 = vpop.f32.mrb[45].mxu0 }
 0x155   : > { %v3102_v27 = vpack.c.bf16 %v3642_v24, %v3646_v26 }
 0x156   : > { %2826 = vmatmul.mubr.msk.f32.gmra.mrb[22].mxu1 %vm325_vm0, %v3520_v23 }
 0x157   : > { %v3652_v29 = vpop.f32.mrb[46].mxu0  ;;  %2836 = vmatprep.mubr.msk.f32.mxu1 %vm3187_vm1, %v3188_v7 }
 0x158   : > { %v3656_v30 = vpop.f32.mrb[47].mxu0 }
 0x159   : > { %v3105_v31 = vpack.c.bf16 %v3652_v29, %v3656_v30 }
 0x15b   : > { %v2744_v32 = vpop.f32.mrb[48].mxu0 }
 0x15c   : > { %v812_v33 = vpop.f32.mrb[49].mxu0 }
 0x15d   : > { %v3048_v34 = vpack.c.bf16 %v2744_v32, %v812_v33 }
 0x15f   : > { %v2747_v47 = vpop.f32.mrb[50].mxu0  ;;  %3049 = vmatpush3.bf16.msra.mxu1 %v3048_v34 }
 0x160   : > { %v822_v48 = vpop.f32.mrb[51].mxu0  ;;  %3050 = vmatprep.subr.bf16.mxu1 %v3186_v5 }
 0x161   : > { %v3051_v49 = vpack.c.bf16 %v2747_v47, %v822_v48  ;;  %v3855_v48 = vstv %s255_s26 }
 0x163   : > { %3052 = vmatpush3.bf16.msra.mxu1 %v3051_v49  ;;  %v3661_v50 = vpop.f32.mrb[52].mxu0  ;;  %v3857_v49 = vstv %s2385_s27 }
 0x164   : > { %3053 = vmatprep.subr.bf16.mxu1 %v3186_v5  ;;  %v832_v51 = vpop.f32.mrb[53].mxu0 }
 0x165   : > { %v3078_v52 = vpack.c.bf16 %v3661_v50, %v832_v51 }
 0x166   : > { %2837 = vmatmul.mubr.msk.f32.vlgmr.msra.gmra.mrb[24].mxu1 %vm325_vm0, %v3497_v14 }
 0x167   : > { %3055 = vmatpush3.bf16.msra.mxu1 %v3054_v17  ;;  %v2753_v59 = vpop.f32.mrb[54].mxu0  ;;  %2839 = vmatprep.mubr.msk.f32.mxu1 %vm3187_vm1, %v3188_v7 }
 0x168   : > { %v842_v60 = vpop.f32.mrb[55].mxu0  ;;  %3056 = vmatprep.subr.bf16.mxu1 %v3186_v5 }
 0x169   : > { %v3081_v61 = vpack.c.bf16 %v2753_v59, %v842_v60 }
 0x16a   : > { %2840 = vmatmul.mubr.msk.f32.gmra.mrb[26].mxu1 %vm325_vm0, %v3506_v18 }
 0x16b   : > { %v2756_v62 = vpop.f32.mrb[56].mxu0  ;;  %3058 = vmatpush3.bf16.msra.mxu1 %v3057_v21  ;;  %2842 = vmatprep.mubr.msk.f32.mxu1 %vm3187_vm1, %v3188_v7 }
 0x16c   : > { %v852_v15 = vpop.f32.mrb[57].mxu0  ;;  %3059 = vmatprep.subr.bf16.mxu1 %v3186_v5 }
 0x16d   : > { %v3108_v16 = vpack.c.bf16 %v2756_v62, %v852_v15 }
 0x16e   : > { %2843 = vmatmul.mubr.msk.f32.gmra.mrb[28].mxu1 %vm325_vm0, %v3520_v23 }
 0x16f   : > { %v2759_v17 = vpop.f32.mrb[58].mxu0  ;;  %3109 = vmatpush3.bf16.msra.mxu0 %v3108_v16  ;;  %2853 = vmatprep.mubr.msk.f32.mxu1 %vm3187_vm1, %v3188_v7 }
 0x170   : > { %v862_v63 = vpop.f32.mrb[59].mxu0  ;;  %3110 = vmatprep.subr.bf16.mxu0 %v3186_v5 }
 0x171   : > { %v3111_v19 = vpack.c.bf16 %v2759_v17, %v862_v63 }
 0x172   : > { %2854 = vmatmul.mubr.msk.f32.vlgmr.msra.gmra.mrb[30].mxu1 %vm325_vm0, %v3497_v14 }
 0x173   : > { %3061 = vmatpush3.bf16.msra.mxu1 %v3060_v37  ;;  %3112 = vmatpush3.bf16.msra.mxu0 %v3111_v19 }
 0x174   : > { %2856 = vmatprep.mubr.msk.f32.mxu1 %vm3187_vm1, %v3188_v7  ;;  %3062 = vmatprep.subr.bf16.mxu1 %v3186_v5 }
 0x176   : > { %2857 = vmatmul.mubr.msk.f32.gmra.mrb[32].mxu1 %vm325_vm0, %v3506_v18  ;;  %3007 = vmatmul.mubr.msk.f32.vlgmr.msra.gmra.mrb[70].mxu0 %vm325_vm0, %v3497_v14 }
 0x177   : > { %3064 = vmatpush3.bf16.msra.mxu1 %v3063_v40  ;;  %2859 = vmatprep.mubr.msk.f32.mxu1 %vm3187_vm1, %v3188_v7 }
 0x178   : > { %3009 = vmatprep.mubr.msk.f32.mxu0 %vm3187_vm1, %v3188_v7  ;;  %3065 = vmatprep.subr.bf16.mxu1 %v3186_v5 }
 0x17a   : > { %2860 = vmatmul.mubr.msk.f32.gmra.mrb[34].mxu1 %vm325_vm0, %v3520_v23  ;;  %3010 = vmatmul.mubr.msk.f32.gmra.mrb[72].mxu0 %vm325_vm0, %v3506_v18 }
 0x17b   : > { %2870 = vmatprep.mubr.msk.f32.mxu1 %vm3187_vm1, %v3188_v7  ;;  %3012 = vmatprep.mubr.msk.f32.mxu0 %vm3187_vm1, %v3188_v7 }
 0x17e   : > { %2871 = vmatmul.mubr.msk.f32.vlgmr.msra.gmra.mrb[36].mxu1 %vm325_vm0, %v3497_v14  ;;  %3013 = vmatmul.mubr.msk.f32.gmra.mrb[74].mxu0 %vm325_vm0, %v3520_v23 }
 0x17f   : > { %3067 = vmatpush3.bf16.msra.mxu1 %v3066_v55  ;;  %2873 = vmatprep.mubr.msk.f32.mxu1 %vm3187_vm1, %v3188_v7 }
 0x180   : > { %3068 = vmatprep.subr.bf16.mxu1 %v3186_v5 }
 0x182   : > { %2874 = vmatmul.mubr.msk.f32.gmra.mrb[38].mxu1 %vm325_vm0, %v3506_v18 }
 0x183   : > { %3070 = vmatpush3.bf16.msra.mxu1 %v3069_v58  ;;  %2876 = vmatprep.mubr.msk.f32.mxu1 %vm3187_vm1, %v3188_v7 }
 0x184   : > { %3071 = vmatprep.subr.bf16.mxu1 %v3186_v5 }
 0x186   : > { %2877 = vmatmul.mubr.msk.f32.gmra.mrb[40].mxu1 %vm325_vm0, %v3520_v23 }
 0x187   : > { %2887 = vmatprep.mubr.msk.f32.mxu1 %vm3187_vm1, %v3188_v7 }
 0x18a   : > { %2888 = vmatmul.mubr.msk.f32.vlgmr.msra.gmra.mrb[42].mxu1 %vm325_vm0, %v3497_v14 }
 0x18b   : > { %3073 = vmatpush3.bf16.msra.mxu1 %v3072_v11  ;;  %2890 = vmatprep.mubr.msk.f32.mxu1 %vm3187_vm1, %v3188_v7 }
 0x18c   : > { %3074 = vmatprep.subr.bf16.mxu1 %v3186_v5 }
 0x18e   : > { %2891 = vmatmul.mubr.msk.f32.gmra.mrb[44].mxu1 %vm325_vm0, %v3506_v18 }
 0x18f   : > { %3076 = vmatpush3.bf16.msra.mxu1 %v3075_v22  ;;  %2893 = vmatprep.mubr.msk.f32.mxu1 %vm3187_vm1, %v3188_v7 }
 0x190   : > { %3077 = vmatprep.subr.bf16.mxu1 %v3186_v5 }
 0x192   : > { %2894 = vmatmul.mubr.msk.f32.gmra.mrb[46].mxu1 %vm325_vm0, %v3520_v23 }
 0x193   : > { %2904 = vmatprep.mubr.msk.f32.mxu1 %vm3187_vm1, %v3188_v7 }
 0x196   : > { %2905 = vmatmul.mubr.msk.f32.vlgmr.msra.gmra.mrb[48].mxu1 %vm325_vm0, %v3497_v14 }
 0x197   : > { %2907 = vmatprep.mubr.msk.f32.mxu1 %vm3187_vm1, %v3188_v7  ;;  %3079 = vmatpush3.bf16.msra.mxu1 %v3078_v52 }
 0x198   : > { %3080 = vmatprep.subr.bf16.mxu1 %v3186_v5 }
 0x19a   : > { %2908 = vmatmul.mubr.msk.f32.gmra.mrb[50].mxu1 %vm325_vm0, %v3506_v18 }
 0x19b   : > { %2910 = vmatprep.mubr.msk.f32.mxu1 %vm3187_vm1, %v3188_v7  ;;  %3082 = vmatpush3.bf16.msra.mxu1 %v3081_v61 }
 0x19c   : > { %3113 = vmatprep.subr.bf16.mxu1 %v3186_v5 }
 0x19e   : > { %2911 = vmatmul.mubr.msk.f32.gmra.mrb[52].mxu1 %vm325_vm0, %v3520_v23 }
 0x19f   : > { %2921 = vmatprep.mubr.msk.f32.mxu1 %vm3187_vm1, %v3188_v7 }
 0x1a2   : > { %2922 = vmatmul.mubr.msk.f32.vlgmr.msra.gmra.mrb[54].mxu1 %vm325_vm0, %v3497_v14 }
 0x1a3   : > { %3115 = vmatpush3.bf16.msra.mxu1 %v3524_v25  ;;  %2924 = vmatprep.mubr.msk.f32.mxu1 %vm3187_vm1, %v3188_v7 }
 0x1a4   : > { %3114 = vmatprep.subr.bf16.mxu1 %v3186_v5 }
 0x1a6   : > { %2925 = vmatmul.mubr.msk.f32.gmra.mrb[56].mxu1 %vm325_vm0, %v3506_v18 }
 0x1a7   : > { %3116 = vmatpush3.bf16.msra.mxu1 %v3532_v28  ;;  %2927 = vmatprep.mubr.msk.f32.mxu1 %vm3187_vm1, %v3188_v7 }
 0x1a8   : > { %3089 = vmatprep.subr.bf16.mxu1 %v3186_v5 }
 0x1aa   : > { %2928 = vmatmul.mubr.msk.f32.gmra.mrb[58].mxu1 %vm325_vm0, %v3520_v23 }
 0x1ab   : > { %2944 = vmatprep.mubr.msk.f32.mxu1 %vm3187_vm1, %v3188_v7 }
 0x1ae   : > { %2945 = vmatmul.mubr.msk.f32.vlgmr.msra.gmra.mrb[60].mxu1 %vm325_vm0, %v3520_v23 }
 0x1af   : > { %3091 = vmatpush3.bf16.msra.mxu1 %v3090_v43  ;;  %2955 = vmatprep.mubr.msk.f32.mxu1 %vm3187_vm1, %v3188_v7 }
 0x1b0   : > { %3092 = vmatprep.subr.bf16.mxu1 %v3186_v5 }
 0x1b3   : > { %3094 = vmatpush3.bf16.msra.mxu1 %v3093_v46 }
 0x1b4   : > { %3101 = vmatprep.subr.bf16.mxu1 %v3186_v5 }
 0x1b6   : > { %2956 = vmatmul.mubr.msk.f32.vlgmr.msra.gmra.mrb[62].mxu1 %vm325_vm0, %v3497_v14 }
 0x1b7   : > { %3103 = vmatpush3.bf16.msra.mxu1 %v3102_v27  ;;  %2958 = vmatprep.mubr.msk.f32.mxu1 %vm3187_vm1, %v3188_v7 }
 0x1b8   : > { %3104 = vmatprep.subr.bf16.mxu1 %v3186_v5 }
 0x1ba   : > { %2959 = vmatmul.mubr.msk.f32.gmra.mrb[64].mxu1 %vm325_vm0, %v3506_v18 }
 0x1bb   : > { %3106 = vmatpush3.bf16.msra.mxu1 %v3105_v31  ;;  %2961 = vmatprep.mubr.msk.f32.mxu1 %vm3187_vm1, %v3188_v7 }
 0x1be   : > { %2962 = vmatmul.mubr.msk.f32.gmra.mrb[66].mxu1 %vm325_vm0, %v3520_v23 }
 0x1bf   : > { %2989 = vmatprep.mubr.msk.f32.mxu1 %vm3187_vm1, %v3188_v7 }
 0x1c2   : > { %2990 = vmatmul.mubr.msk.f32.vlgmr.msra.gmra.mrb[68].mxu1 %vm325_vm0, %v3497_v14 }
 0x1c3   : > { %2992 = vmatprep.mubr.msk.f32.mxu1 %vm3187_vm1, %v3188_v7 }
 0x1c6   : > { %2993 = vmatmul.mubr.msk.f32.gmra.mrb[70].mxu1 %vm325_vm0, %v3506_v18 }
 0x1c7   : > { %2995 = vmatprep.mubr.msk.f32.mxu1 %vm3187_vm1, %v3188_v7 }
 0x1ca   : > { %2996 = vmatmul.mubr.msk.f32.gmra.mrb[72].mxu1 %vm325_vm0, %v3520_v23 }
 0x1d9   : > { %v978_v5 = vpop.f32.mrb[0].mxu1 }
 0x1da   : > { %v2770_v20 = vpop.f32.mrb[1].mxu1  ;;  %v1312_v18 = vmul.f32 %v978_v5, %v978_v5 }
 0x1dd   : > { %v983_v21 = vpop.f32.mrb[2].mxu1 }
 0x1de   : > { %v2773_v25 = vpop.f32.mrb[3].mxu1  ;;  %v1313_v43 = vmul.f32 %v983_v21, %v983_v21 }
 0x1e1   : > { %v988_v28 = vpop.f32.mrb[4].mxu1 }
 0x1e2   : > { %v2776_v35 = vpop.f32.mrb[5].mxu1  ;;  %v1314_v55 = vmul.f32 %v988_v28, %v988_v28 }
 0x1e9   : > { %v3827_v36 = vpop.f32.mrb[60].mxu0 }
 0x1ea   : > { %v2940_v14 = vpop.f32.mrb[61].mxu0  ;;  %v3839_v12 = vmul.f32 %v3827_v36, %v3827_v36 }
 0x1ed   : > { %v3829_v37 = vpop.f32.mrb[62].mxu0 }
 0x1ee   : > { %v2943_v38 = vpop.f32.mrb[63].mxu0  ;;  %v3847_v26 = vmul.f32 %v3829_v37, %v3829_v37 }
 0x1f1   : > { %v1058_v39 = vpop.f32.mrb[6].mxu1 }
 0x1f2   : > { %v1315_v40 = vmul.f32 %v1058_v39, %v1058_v39  ;;  %v3831_v41 = vmul.f32 %v1058_v39, %v978_v5  ;;  %v2787_v7 = vpop.f32.mrb[7].mxu1 }
 0x1f4   : > { %v1353_v42 = vadd.f32 %v1315_v40, %v1312_v18  ;;  %v1343_v38 = vmul.f32 2.0, %v3831_v41 }
 0x1f5   : > { %v1063_v23 = vpop.f32.mrb[8].mxu1 }
 0x1f6   : > { %v1316_v44 = vmul.f32 %v1063_v23, %v1063_v23  ;;  %v3833_v45 = vmul.f32 %v1063_v23, %v983_v21  ;;  %v2790_v46 = vpop.f32.mrb[9].mxu1  ;;  %v1356_v52 = vadd.f32 %v1353_v42, %v3855_v48  ;;  %v1347_v23 = vadd.f32 %v3855_v48, %v1343_v38 }
 0x1f8   : > { %v1354_v53 = vadd.f32 %v1316_v44, %v1313_v43  ;;  %v1344_v7 = vmul.f32 2.0, %v3833_v45 }
 0x1f9   : > { %v1068_v54 = vpop.f32.mrb[10].mxu1 }
 0x1fa   : > { %v1317_v56 = vmul.f32 %v1068_v54, %v1068_v54  ;;  %v3835_v57 = vmul.f32 %v1068_v54, %v988_v28  ;;  %v2793_v58 = vpop.f32.mrb[11].mxu1  ;;  %v1357_v17 = vadd.f32 %v1354_v53, %v3855_v48 }
 0x1fc   : > { %v1355_v0 = vadd.f32 %v1317_v56, %v1314_v55  ;;  %v1345_v58 = vmul.f32 2.0, %v3835_v57 }
 0x1fe   : > { %v1358_v25 = vadd.f32 %v1355_v0, %v3855_v48 }
 0x209   : > { %v1138_v1 = vpop.f32.mrb[12].mxu1 }
 0x20a   : > { %v1321_v2 = vsub.f32 %v1138_v1, %v1312_v18  ;;  %v2804_v3 = vpop.f32.mrb[13].mxu1 }
 0x20d   : > { %v1143_v4 = vpop.f32.mrb[14].mxu1 }
 0x20e   : > { %v1322_v6 = vsub.f32 %v1143_v4, %v1313_v43  ;;  %v2807_v8 = vpop.f32.mrb[15].mxu1 }
 0x211   : > { %v1148_v9 = vpop.f32.mrb[16].mxu1 }
 0x212   : > { %v1323_v10 = vsub.f32 %v1148_v9, %v1314_v55  ;;  %v2810_v11 = vpop.f32.mrb[17].mxu1  ;;  %v1349_v9 = vadd.f32 %v3855_v48, %v1345_v58 }
 0x219   : > { %v3841_v13 = vpop.f32.mrb[64].mxu0 }
 0x21a   : > { %v2234_v22 = vsub.f32 %v3841_v13, %v3839_v12  ;;  %v2974_v24 = vpop.f32.mrb[65].mxu0 }
 0x21d   : > { %v3849_v27 = vpop.f32.mrb[66].mxu0 }
 0x21e   : > { %v2235_v29 = vsub.f32 %v3849_v27, %v3847_v26  ;;  %v2977_v30 = vpop.f32.mrb[67].mxu0 }
 0x221   : > { %v1218_v31 = vpop.f32.mrb[18].mxu1  ;;  %v3853_v32 = vpop.f32.mrb[68].mxu0 }
 0x222   : > { %v1324_v33 = vsub.f32 %v1218_v31, %v1315_v40  ;;  %v2821_v34 = vpop.f32.mrb[19].mxu1  ;;  %v2980_v47 = vpop.f32.mrb[69].mxu0 }
 0x224   : > { %v1337_v50 = vadd.f32 %v1324_v33, %v1321_v2 }
 0x225   : > { %v1223_v51 = vpop.f32.mrb[20].mxu1 }
 0x226   : > { %v1340_v59 = vadd.f32 %v1337_v50, %v3857_v49  ;;  %v1325_v60 = vsub.f32 %v1223_v51, %v1316_v44  ;;  %v2824_v61 = vpop.f32.mrb[21].mxu1 }
 0x228   : > { %v1359_v62 = vmul.f32 %v1356_v52, %v1340_v59  ;;  %v1338_v15 = vadd.f32 %v1325_v60, %v1322_v6 }
 0x229   : > { %v1228_v16 = vpop.f32.mrb[22].mxu1 }
 0x22a   : > { %v1341_v63 = vadd.f32 %v1338_v15, %v3857_v49  ;;  %v1326_v19 = vsub.f32 %v1228_v16, %v1317_v56  ;;  %v2827_v5 = vpop.f32.mrb[23].mxu1  ;;  %3140 = vrcp.f32 %v1359_v62  ;;  %v1348_v56 = vadd.f32 %v3855_v48, %v1344_v7 }
 0x22c   : > { %v1360_v20 = vmul.f32 %v1357_v17, %v1341_v63  ;;  %v1339_v21 = vadd.f32 %v1326_v19, %v1323_v10 }
 0x22e   : > { %v1342_v28 = vadd.f32 %v1339_v21, %v3857_v49  ;;  %3142 = vrcp.f32 %v1360_v20 }
 0x230   : > { %v1361_v35 = vmul.f32 %v1358_v25, %v1342_v28 }
 0x232   : > { %3144 = vrcp.f32 %v1361_v35 }
 0x234   : > { %v3141_v55 = vpop.eup %3140 }
 0x239   : > { %v1298_v14 = vpop.f32.mrb[24].mxu1 }
 0x23a   : > { %v1327_v39 = vsub.f32 %v1298_v14, %v3831_v41  ;;  %v2838_v18 = vpop.f32.mrb[25].mxu1 }
 0x23c   : > { %v1330_v40 = vmul.f32 2.0, %v1327_v39 }
 0x23d   : > { %v1303_v42 = vpop.f32.mrb[26].mxu1 }
 0x23e   : > { %v1334_v43 = vadd.f32 %v3857_v49, %v1330_v40  ;;  %v1328_v44 = vsub.f32 %v1303_v42, %v3833_v45  ;;  %v2841_v46 = vpop.f32.mrb[27].mxu1  ;;  %v3143_v45 = vpop.eup %3142 }
 0x23f   : > { %v3145_v31 = vpop.eup %3144 }
 0x240   : > { %v1350_v53 = vmul.f32 %v1347_v23, %v1334_v43  ;;  %v1331_v54 = vmul.f32 2.0, %v1328_v44 }
 0x241   : > { %v1308_v41 = vpop.f32.mrb[28].mxu1 }
 0x242   : > { %v1335_v0 = vadd.f32 %v3857_v49, %v1331_v54  ;;  %v1329_v1 = vsub.f32 %v1308_v41, %v3835_v57  ;;  %v2844_v2 = vpop.f32.mrb[29].mxu1  ;;  %v3875_v3 = vmul.f32 %v3141_v55, %v1350_v53 }
 0x244   : > { %v1351_v4 = vmul.f32 %v1348_v56, %v1335_v0  ;;  %v1332_v6 = vmul.f32 2.0, %v1329_v1 }
 0x245   : > { %v1434_v8 = vpop.f32.mrb[30].mxu1 }
 0x246   : > { %v1336_v10 = vadd.f32 %v3857_v49, %v1332_v6  ;;  %v2855_v11 = vpop.f32.mrb[31].mxu1  ;;  %v3879_v24 = vmul.f32 %v3143_v45, %v1351_v4  ;;  %v1768_v15 = vmul.f32 %v1434_v8, %v1434_v8 }
 0x248   : > { %v1352_v30 = vmul.f32 %v1349_v9, %v1336_v10 }
 0x249   : > { %v1439_v33 = vpop.f32.mrb[32].mxu1  ;;  %v3881_v34 = vpop.f32.mrb[70].mxu0 }
 0x24a   : > { %v2858_v57 = vpop.f32.mrb[33].mxu1  ;;  %v3008_v47 = vpop.f32.mrb[71].mxu0  ;;  %v3883_v50 = vmul.f32 %v3145_v31, %v1352_v30  ;;  %v1769_v21 = vmul.f32 %v1439_v33, %v1439_v33 }
 0x24d   : > { %v1444_v51 = vpop.f32.mrb[34].mxu1  ;;  %v3885_v52 = vpop.f32.mrb[72].mxu0 }
 0x24e   : > { %v2861_v59 = vpop.f32.mrb[35].mxu1  ;;  %v3011_v60 = vpop.f32.mrb[73].mxu0  ;;  %v1770_v39 = vmul.f32 %v1444_v51, %v1444_v51 }
 0x251   : > { %v1514_v61 = vpop.f32.mrb[36].mxu1  ;;  %v3887_v62 = vpop.f32.mrb[74].mxu0 }
 0x252   : > { %v1771_v16 = vmul.f32 %v1514_v61, %v1514_v61  ;;  %v1774_v17 = vmul.f32 %v1514_v61, %v1434_v8  ;;  %v2872_v63 = vpop.f32.mrb[37].mxu1  ;;  %v3014_v19 = vpop.f32.mrb[75].mxu0 }
 0x254   : > { %v1807_v5 = vadd.f32 %v1771_v16, %v1768_v15  ;;  %v1798_v60 = vmul.f32 2.0, %v1774_v17 }
 0x255   : > { %v1519_v20 = vpop.f32.mrb[38].mxu1 }
 0x256   : > { %v1772_v25 = vmul.f32 %v1519_v20, %v1519_v20  ;;  %v1775_v28 = vmul.f32 %v1519_v20, %v1439_v33  ;;  %v2875_v35 = vpop.f32.mrb[39].mxu1  ;;  %v1810_v6 = vadd.f32 %v1807_v5, %v3855_v48 }
 0x257   : > { %v1801_v35 = vadd.f32 %v1798_v60, %v3855_v48 }
 0x258   : > { %v1808_v14 = vadd.f32 %v1772_v25, %v1769_v21 }
 0x259   : > { %v1524_v38 = vpop.f32.mrb[40].mxu1 }
 0x25a   : > { %v1773_v18 = vmul.f32 %v1524_v38, %v1524_v38  ;;  %v1776_v40 = vmul.f32 %v1524_v38, %v1444_v51  ;;  %v2878_v7 = vpop.f32.mrb[41].mxu1  ;;  %v1811_v31 = vadd.f32 %v1808_v14, %v3855_v48 }
 0x25c   : > { %v1809_v42 = vadd.f32 %v1773_v18, %v1770_v39 }
 0x25d   : > { %v1594_v23 = vpop.f32.mrb[42].mxu1 }
 0x25e   : > { %v1777_v43 = vsub.f32 %v1594_v23, %v1768_v15  ;;  %v2889_v44 = vpop.f32.mrb[43].mxu1  ;;  %v1812_v15 = vadd.f32 %v1809_v42, %v3855_v48 }
 0x25f   : > { %v1800_v44 = vmul.f32 2.0, %v1776_v40 }
 0x261   : > { %v1599_v46 = vpop.f32.mrb[44].mxu1 }
 0x262   : > { %v1778_v53 = vsub.f32 %v1599_v46, %v1769_v21  ;;  %v2892_v54 = vpop.f32.mrb[45].mxu1  ;;  %v1799_v21 = vmul.f32 2.0, %v1775_v28 }
 0x264   : > { %v1802_v42 = vadd.f32 %v1799_v21, %v3855_v48 }
 0x265   : > { %v1604_v55 = vpop.f32.mrb[46].mxu1 }
 0x266   : > { %v1779_v56 = vsub.f32 %v1604_v55, %v1770_v39  ;;  %v2895_v41 = vpop.f32.mrb[47].mxu1 }
 0x269   : > { %v1674_v58 = vpop.f32.mrb[48].mxu1 }
 0x26a   : > { %v1780_v0 = vsub.f32 %v1674_v58, %v1771_v16  ;;  %v2906_v1 = vpop.f32.mrb[49].mxu1 }
 0x26c   : > { %v1792_v2 = vadd.f32 %v1780_v0, %v1777_v43  ;;  %v1803_v0 = vadd.f32 %v1800_v44, %v3855_v48 }
 0x26d   : > { %v1679_v4 = vpop.f32.mrb[50].mxu1 }
 0x26e   : > { %v1795_v45 = vadd.f32 %v1792_v2, %v3857_v49  ;;  %v1781_v8 = vsub.f32 %v1679_v4, %v1772_v25  ;;  %v2909_v9 = vpop.f32.mrb[51].mxu1 }
 0x270   : > { %v1813_v10 = vmul.f32 %v1810_v6, %v1795_v45  ;;  %v1793_v11 = vadd.f32 %v1781_v8, %v1778_v53 }
 0x271   : > { %v1684_v30 = vpop.f32.mrb[52].mxu1 }
 0x272   : > { %3146 = vrcp.f32 %v1813_v10  ;;  %v1796_v33 = vadd.f32 %v1793_v11, %v3857_v49  ;;  %v1782_v57 = vsub.f32 %v1684_v30, %v1773_v18  ;;  %v2912_v47 = vpop.f32.mrb[53].mxu1 }
 0x274   : > { %v1814_v51 = vmul.f32 %v1811_v31, %v1796_v33  ;;  %v1794_v59 = vadd.f32 %v1782_v57, %v1779_v56 }
 0x275   : > { %v1754_v61 = vpop.f32.mrb[54].mxu1 }
 0x276   : > { %3148 = vrcp.f32 %v1814_v51  ;;  %v1797_v16 = vadd.f32 %v1794_v59, %v3857_v49  ;;  %v1783_v63 = vsub.f32 %v1754_v61, %v1774_v17  ;;  %v2923_v19 = vpop.f32.mrb[55].mxu1 }
 0x278   : > { %v1815_v5 = vmul.f32 %v1812_v15, %v1797_v16  ;;  %v1786_v20 = vmul.f32 2.0, %v1783_v63 }
 0x279   : > { %v1759_v25 = vpop.f32.mrb[56].mxu1 }
 0x27a   : > { %3150 = vrcp.f32 %v1815_v5  ;;  %v1789_v14 = vadd.f32 %v1786_v20, %v3857_v49  ;;  %v1784_v38 = vsub.f32 %v1759_v25, %v1775_v28  ;;  %v2926_v39 = vpop.f32.mrb[57].mxu1 }
 0x27c   : > { %v3147_v18 = vpop.eup %3146  ;;  %v1804_v7 = vmul.f32 %v1801_v35, %v1789_v14  ;;  %v1787_v23 = vmul.f32 2.0, %v1784_v38 }
 0x27d   : > { %v1764_v43 = vpop.f32.mrb[58].mxu1 }
 0x27e   : > { %v1790_v17 = vadd.f32 %v1787_v23, %v3857_v49  ;;  %v1785_v46 = vsub.f32 %v1764_v43, %v1776_v40  ;;  %v2929_v53 = vpop.f32.mrb[59].mxu1  ;;  %v1817_v54 = vmul.f32 %v3147_v18, %v1804_v7 }
 0x280   : > { %v3149_v55 = vpop.eup %3148  ;;  %v1805_v56 = vmul.f32 %v1802_v42, %v1790_v17  ;;  %v1788_v41 = vmul.f32 2.0, %v1785_v46  ;;  %v3900_v58 = vadd.f32 %v1817_v54, %v3875_v3 }
 0x281   : > { %v1901_v28 = vpop.f32.mrb[60].mxu1 }
 0x282   : > { %v1791_v1 = vadd.f32 %v1788_v41, %v3857_v49  ;;  %v2227_v2 = vmul.f32 %v1901_v28, %v1901_v28  ;;  %v2946_v4 = vpop.f32.mrb[61].mxu1  ;;  %v1819_v6 = vmul.f32 %v3149_v55, %v1805_v56 }
 0x284   : > { %v3151_v45 = vpop.eup %3150  ;;  %v1806_v8 = vmul.f32 %v1803_v0, %v1791_v1  ;;  %v2236_v40 = vsub.f32 %v3853_v32, %v2227_v2  ;;  %v3906_v9 = vadd.f32 %v1819_v6, %v3879_v24 }
 0x286   : > { %v1821_v10 = vmul.f32 %v3151_v45, %v1806_v8 }
 0x288   : > { %v3909_v11 = vadd.f32 %v1821_v10, %v3883_v50 }
 0x289   : > { %v1971_v3 = vpop.f32.mrb[62].mxu1 }
 0x28a   : > { %v2228_v30 = vmul.f32 %v1971_v3, %v1971_v3  ;;  %v2231_v31 = vmul.f32 %v1971_v3, %v3827_v36  ;;  %v2957_v33 = vpop.f32.mrb[63].mxu1 }
 0x28c   : > { %v2240_v57 = vsub.f32 %v3881_v34, %v2231_v31  ;;  %v2255_v47 = vmul.f32 2.0, %v2231_v31  ;;  %v2264_v51 = vadd.f32 %v2228_v30, %v3839_v12 }
 0x28d   : > { %v1976_v59 = vpop.f32.mrb[64].mxu1 }
 0x28e   : > { %v2243_v60 = vmul.f32 2.0, %v2240_v57  ;;  %v2229_v32 = vmul.f32 %v1976_v59, %v1976_v59  ;;  %v2960_v61 = vpop.f32.mrb[65].mxu1  ;;  %v2232_v24 = vmul.f32 %v1976_v59, %v3829_v37  ;;  %v2258_v50 = vadd.f32 %v2255_v47, %v3855_v48 }
 0x28f   : > { %v2267_v46 = vadd.f32 %v2264_v51, %v3855_v48 }
 0x290   : > { %v2246_v15 = vadd.f32 %v2243_v60, %v3857_v49  ;;  %v2265_v16 = vadd.f32 %v2229_v32, %v3847_v26  ;;  %v2241_v36 = vsub.f32 %v3885_v52, %v2232_v24  ;;  %v2256_v63 = vmul.f32 2.0, %v2232_v24 }
 0x291   : > { %v1981_v19 = vpop.f32.mrb[66].mxu1 }
 0x292   : > { %v2230_v34 = vmul.f32 %v1981_v19, %v1981_v19  ;;  %v2233_v5 = vmul.f32 %v1981_v19, %v1901_v28  ;;  %v2963_v20 = vpop.f32.mrb[67].mxu1  ;;  %v2261_v21 = vmul.f32 %v2258_v50, %v2246_v15  ;;  %v2244_v25 = vmul.f32 2.0, %v2241_v36 }
 0x293   : > { %v2259_v39 = vadd.f32 %v2256_v63, %v3855_v48  ;;  %v2268_v1 = vadd.f32 %v2265_v16, %v3855_v48 }
 0x294   : > { %v2242_v35 = vsub.f32 %v3887_v62, %v2233_v5  ;;  %v2257_v14 = vmul.f32 2.0, %v2233_v5  ;;  %v2266_v38 = vadd.f32 %v2230_v34, %v2227_v2  ;;  %v2247_v37 = vadd.f32 %v2244_v25, %v3857_v49 }
 0x295   : > { %v2131_v18 = vpop.f32.mrb[68].mxu1 }
 0x296   : > { %v2245_v7 = vmul.f32 2.0, %v2242_v35  ;;  %v2237_v23 = vsub.f32 %v2131_v18, %v2228_v30  ;;  %v2991_v42 = vpop.f32.mrb[69].mxu1  ;;  %v2262_v52 = vmul.f32 %v2259_v39, %v2247_v37  ;;  %v2260_v44 = vadd.f32 %v2257_v14, %v3855_v48 }
 0x297   : > { %v2269_v6 = vadd.f32 %v2266_v38, %v3855_v48 }
 0x298   : > { %v2248_v43 = vadd.f32 %v2245_v7, %v3857_v49  ;;  %v2249_v17 = vadd.f32 %v2237_v23, %v2234_v22 }
 0x299   : > { %v2136_v62 = vpop.f32.mrb[70].mxu1 }
 0x29a   : > { %v2252_v53 = vadd.f32 %v2249_v17, %v3857_v49  ;;  %v2238_v54 = vsub.f32 %v2136_v62, %v2229_v32  ;;  %v2994_v55 = vpop.f32.mrb[71].mxu1  ;;  %v2263_v56 = vmul.f32 %v2260_v44, %v2248_v43 }
 0x29c   : > { %v2270_v41 = vmul.f32 %v2267_v46, %v2252_v53  ;;  %v2250_v28 = vadd.f32 %v2238_v54, %v2235_v29 }
 0x29d   : > { %v2141_v0 = vpop.f32.mrb[72].mxu1 }
 0x29e   : > { %3152 = vrcp.f32 %v2270_v41  ;;  %v2253_v12 = vadd.f32 %v2250_v28, %v3857_v49  ;;  %v2239_v13 = vsub.f32 %v2141_v0, %v2230_v34  ;;  %v2997_v22 = vpop.f32.mrb[73].mxu1 }
 0x2a0   : > { %v2271_v2 = vmul.f32 %v2268_v1, %v2253_v12  ;;  %v2251_v4 = vadd.f32 %v2239_v13, %v2236_v40 }
 0x2a2   : > { %3154 = vrcp.f32 %v2271_v2  ;;  %v2254_v45 = vadd.f32 %v2251_v4, %v3857_v49 }
 0x2a4   : > { %v2272_v8 = vmul.f32 %v2269_v6, %v2254_v45 }
 0x2a6   : > { %3156 = vrcp.f32 %v2272_v8 }
 0x2a8   : > { %v3153_v10 = vpop.eup %3152 }
 0x2a9   : > { %v2274_v26 = vmul.f32 %v3153_v10, %v2261_v21 }
 0x2ab   : > { %v2279_v27 = vadd.f32 %v2274_v26, %v3900_v58 }
 0x2ac   : > { %v3155_v29 = vpop.eup %3154 }
 0x2ad   : > { %v2283_v3 = vsel %vm2282_vm2, %v2279_v27, 0.0  ;;  %v2276_v30 = vmul.f32 %v3155_v29, %v2262_v52 }
 0x2ae   : > { %2284 = vadd.xlane.f32.xlu1 %v2283_v3 }
 0x2af   : > { %v2280_v31 = vadd.f32 %v2276_v30, %v3906_v9 }
 0x2b0   : > { %v3157_v33 = vpop.eup %3156 }
 0x2b1   : > { %v2286_v40 = vsel %vm2282_vm2, %v2280_v31, 0.0  ;;  %v2278_v57 = vmul.f32 %v3157_v33, %v2263_v56 }
 0x2b2   : > { %2287 = vadd.xlane.f32.xlu1 %v2286_v40 }
 0x2b3   : > { %v2281_v48 = vadd.f32 %v2278_v57, %v3909_v11 }
 0x2b5   : > { %v2290_v49 = vsel %vm2289_vm3, %v2281_v48, 0.0 }
 0x2b6   : > { %2291 = vadd.xlane.f32.xlu1 %v2290_v49 }
 0x33b   : > { %v2285_v47 = vpop.xlane.xlu1 %2284 }
 0x33f   : > { %v2288_v51 = vpop.xlane.xlu1 %2287 }
 0x340   : > { %v2293_v58 = vadd.f32 %v2288_v51, %v2285_v47 }
 0x343   : > { %v2292_v59 = vpop.xlane.xlu1 %2291 }
 0x344   : > { %v2295_v60 = vsel %vm2294_vm4, %v2292_v59, 0.0 }
 0x345   : > { %v2296_v32 = vadd.f32 %v2295_v60, %v2293_v58 }
 0x347   : > { %v2297_v61 = vrot.slane %v2296_v32, 4 }
 0x349   : > { %v2298_v24 = vadd.f32 %v2297_v61, %v2296_v32 }
 0x34b   : > { %v2299_v9 = vrot.slane %v2298_v24, 2 }
 0x34d   : > { %v2300_v15 = vadd.f32 %v2299_v9, %v2298_v24 }
 0x34f   : > { %v2301_v50 = vrot.slane %v2300_v15, 1 }
 0x351   : > { %v2302_v11 = vadd.f32 %v2301_v50, %v2300_v15 }
 0x353   : > { %2304 = vst.msk [vmem:[%s254_s30] sm:$0x1] %vm2303_vm5, %v2302_v11 }
 0x354 PF: > { %s16_s18 = sadd.s32 1, %s3183_s18  }
 0x355   : > { %p13_p1 = scmp.ge.s32.totalorder %s16_s18, 4  }
 0x357   :  { %15 = sbr.rel (!%p13_p1) target bundleno = 1 (0x1), region = 78 }
 0x35e   :  { %2322 = vsyncpa [#allocation3], 1 }
 0x35f   :  { %2324 = vsyncpa [#allocation3 + $0x1], 1 }

</bundles_post_ra>
